<compile_context>
chip_gen: v7x
topology: tpu7x:2x2x1
jax: 0.10.0
libtpu: 0.0.40
codegen_flags: <defaults>
</compile_context>

<pallas_src>
import math

import jax
import jax.numpy as jnp
from jax.experimental import pallas as pl
from jax.experimental.pallas import tpu as pltpu

MODEL_DIM = 32
NUM_HEADS = 4
HEAD_DIM = MODEL_DIM // NUM_HEADS
DIM_FF = 64
SEQ = 8            # n_agents == max_agents
BATCH = 2
N = BATCH * SEQ    # flattened rows handled by one kernel invocation
EPS = 1e-5         # nn.LayerNorm default eps
NEG_BIG = -1e9     # additive mask bias (exp underflows to exactly 0 in f32)


# ---------------------------------------------------------------------------
# math helpers (layer norm shared by the kernel and the pure-JAX reference)
# ---------------------------------------------------------------------------
def _layer_norm(x, g, b):
    mu = jnp.mean(x, axis=-1, keepdims=True)
    xc = x - mu
    var = jnp.mean(xc * xc, axis=-1, keepdims=True)
    return xc * jax.lax.rsqrt(var + EPS) * g + b


def _gelu_exact(x):
    # exact (erf) GELU matching nn.GELU(); erf via Abramowitz–Stegun 7.1.26
    # polynomial (|err| <= 1.5e-7) because lax.erf may not lower in Mosaic.
    z = x * (1.0 / math.sqrt(2.0))
    a = jnp.abs(z)
    t = 1.0 / (1.0 + 0.3275911 * a)
    poly = t * (0.254829592 + t * (-0.284496736 + t * (1.421413741
             + t * (-1.453152027 + t * 1.061405429))))
    erf_abs = 1.0 - poly * jnp.exp(-a * a)
    erf = jnp.where(z >= 0.0, erf_abs, -erf_abs)
    return 0.5 * x * (1.0 + erf)


def _mha(q_in, kv_in, wq, wk, wv, wo, bias, hmask):
    """Multi-head attention with heads stacked along sublanes.

    q_in, kv_in : (N, D) f32 activations (queries / key-value source).
    wq          : (D, D) bf16 with the 1/sqrt(HEAD_DIM) scale folded in.
    wk, wv, wo  : (D, D) bf16.
    bias        : (H*N, N) f32 additive block-causal mask (0 allowed / -1e9 masked).
    hmask       : (H*N, D) f32; row block h keeps only the lanes of head h.

    Row block h of the (H*N, *) slabs carries head h, so a single MXU contraction
    computes every head's scores and a single contraction computes every head's
    PV product; the head-output concat is folded into the W_O matmul via hmask
    plus a sublane-block sum (no lane slices / concats).
    """
    q = jnp.dot(q_in.astype(jnp.bfloat16), wq,
                preferred_element_type=jnp.float32)                      # (N, D)
    q_rep = jnp.concatenate([q] * NUM_HEADS, axis=0)                     # (H*N, D)
    qm = (q_rep * hmask).astype(jnp.bfloat16)                            # head-h lanes only

    kv16 = kv_in.astype(jnp.bfloat16)
    k = jnp.dot(kv16, wk, preferred_element_type=jnp.float32).astype(jnp.bfloat16)
    v = jnp.dot(kv16, wv, preferred_element_type=jnp.float32).astype(jnp.bfloat16)

    # all heads' scores in one contraction: (H*N, D) x (N, D) -> (H*N, N)
    s = jax.lax.dot_general(qm, k, (((1,), (1,)), ((), ())),
                            preferred_element_type=jnp.float32) + bias

    # one softmax over the whole stacked slab (minor-axis reductions)
    m = jnp.max(s, axis=-1, keepdims=True)
    e = jnp.exp(s - m)
    p = e * pl.reciprocal(jnp.sum(e, axis=-1, keepdims=True), approx=True)

    # all heads' PV products in one contraction: (H*N, N) x (N, D) -> (H*N, D)
    o = jnp.dot(p.astype(jnp.bfloat16), v, preferred_element_type=jnp.float32)
    o = o * hmask                                                        # keep head-h lanes
    o = o.reshape(NUM_HEADS, q_in.shape[0], MODEL_DIM).sum(axis=0)       # (N, D)
    return jnp.dot(o.astype(jnp.bfloat16), wo, preferred_element_type=jnp.float32)


# ---------------------------------------------------------------------------
# Pallas kernel: full GPTLayer forward, all batch elements flattened to (B*S, D)
# ---------------------------------------------------------------------------
def gpt_layer_kernel(x_ref, enc_ref, bias_ref, hmask_ref, ln_ref,
                     attn_w_ref, w1_ref, w2_ref, o_ref):
    D = MODEL_DIM
    x = x_ref[...]            # (N, D) f32
    enc = enc_ref[...]        # (N, D) f32
    bias = bias_ref[...]      # (H*N, N) f32 additive mask
    hmask = hmask_ref[...]    # (H*N, D) f32 head lane-selection mask
    ln = ln_ref[...]          # (6, D) f32: [ln1_g, ln1_b, ln2_g, ln2_b, ln3_g, ln3_b]
    aw = attn_w_ref[...]      # (8D, D) bf16: [s_wq*scl, s_wk, s_wv, s_wo,
                              #                c_wq*scl, c_wk, c_wv, c_wo]

    # x = LN1(x); masked self-attention; residual; LN2
    x1 = _layer_norm(x, ln[0:1], ln[1:2])
    attn = _mha(x1, x1, aw[0:D], aw[D:2 * D], aw[2 * D:3 * D], aw[3 * D:4 * D],
                bias, hmask)
    x2 = _layer_norm(x1 + attn, ln[2:3], ln[3:4])      # dropout = identity (inference)

    # masked cross-attention: queries from x2, keys/values from encoder output
    cattn = _mha(x2, enc, aw[4 * D:5 * D], aw[5 * D:6 * D], aw[6 * D:7 * D],
                 aw[7 * D:8 * D], bias, hmask)
    x3 = _layer_norm(x2 + cattn, ln[4:5], ln[5:6])

    # feed forward: fc2(gelu(fc1(x)))  -- exact (erf) GELU like nn.GELU()
    h = jnp.dot(x3.astype(jnp.bfloat16), w1_ref[...], preferred_element_type=jnp.float32)
    h = _gelu_exact(h)
    ff = jnp.dot(h.astype(jnp.bfloat16), w2_ref[...], preferred_element_type=jnp.float32)

    o_ref[...] = x3 + ff


# ---------------------------------------------------------------------------
# one-time packing (hoisted out of the per-forward path, per the perf review)
# ---------------------------------------------------------------------------
def prepare_params(params):
    D, H, B, S = MODEL_DIM, NUM_HEADS, BATCH, SEQ
    n = B * S
    scale = jnp.float32(1.0 / math.sqrt(HEAD_DIM))

    # block-diagonal (per batch element) causal additive bias, tiled over head blocks
    tril = params["mask"]                                            # (S, S) 1/0
    allowed = jnp.kron(jnp.eye(B, dtype=jnp.float32), tril)          # (n, n)
    bias = jnp.tile((1.0 - allowed) * jnp.float32(NEG_BIG), (H, 1))  # (H*n, n)

    # head lane-selection mask: row block h keeps only lanes of head h
    row_head = jnp.arange(H * n, dtype=jnp.int32) // n               # (H*n,)
    col_head = jnp.arange(D, dtype=jnp.int32) // HEAD_DIM            # (D,)
    hmask = (row_head[:, None] == col_head[None, :]).astype(jnp.float32)  # (H*n, D)

    ln = jnp.concatenate([params["ln1_g"], params["ln1_b"],
                          params["ln2_g"], params["ln2_b"],
                          params["ln3_g"], params["ln3_b"]], axis=0)      # (6, D) f32

    # eight attention weights as one sublane slab; 1/sqrt(hd) folded into the Q weights;
    # stored bf16 so the kernel's MXU operands need no per-call conversion.
    attn_w = jnp.concatenate(
        [params["s_wq"] * scale, params["s_wk"], params["s_wv"], params["s_wo"],
         params["c_wq"] * scale, params["c_wk"], params["c_wv"], params["c_wo"]],
        axis=0).astype(jnp.bfloat16)                                       # (8D, D)

    return {"bias": bias, "hmask": hmask, "ln": ln, "attn_w": attn_w,
            "w1": params["w1"].astype(jnp.bfloat16),
            "w2": params["w2"].astype(jnp.bfloat16)}


def gpt_layer(x, enc, prep):
    B, S, D = x.shape
    n = B * S
    vmem = pl.BlockSpec(memory_space=pltpu.MemorySpace.VMEM)
    out_flat = pl.pallas_call(
        gpt_layer_kernel,
        out_shape=jax.ShapeDtypeStruct((n, D), jnp.float32),
        in_specs=[vmem] * 8,
        out_specs=vmem,
    )(x.reshape(n, D), enc.reshape(n, D), prep["bias"], prep["hmask"],
      prep["ln"], prep["attn_w"], prep["w1"], prep["w2"])
    return out_flat.reshape(B, S, D)
    # TODO(synk): if this layer is stacked L times, fuse several layers per
    # pallas_call (weights easily fit VMEM) to amortize per-call dispatch cost.


# ---------------------------------------------------------------------------
# deterministic parameter init (orthogonal, matching wt_init_ gains; biases 0)
# ---------------------------------------------------------------------------
def orthogonal(key, out_dim, in_dim, gain):
    n = max(out_dim, in_dim)
    a = jax.random.normal(key, (n, n), dtype=jnp.float32)
    q, r = jnp.linalg.qr(a)
    q = q * jnp.sign(jnp.diagonal(r))
    return (gain * q[:out_dim, :in_dim]).astype(jnp.float32)


# ---------------------------------------------------------------------------
# pure-JAX reference mirroring the PyTorch module (f32, per-batch, per-head)
# ---------------------------------------------------------------------------
def ref_forward(x, enc, p):
    mask = p["mask"]

    def mha(q_in, kv_in, wq, wk, wv, wo):
        Q = q_in @ wq
        K = kv_in @ wk
        V = kv_in @ wv
        heads = []
        for h in range(NUM_HEADS):
            sl = slice(h * HEAD_DIM, (h + 1) * HEAD_DIM)
            s = (Q[:, sl] @ K[:, sl].T) / math.sqrt(HEAD_DIM)
            s = jnp.where(mask == 0.0, -jnp.inf, s)
            pr = jax.nn.softmax(s, axis=-1)
            heads.append(pr @ V[:, sl])
        return jnp.concatenate(heads, axis=-1) @ wo

    def one(xb, eb):
        x1 = _layer_norm(xb, p["ln1_g"], p["ln1_b"])
        x2 = _layer_norm(
            x1 + mha(x1, x1, p["s_wq"], p["s_wk"], p["s_wv"], p["s_wo"]),
            p["ln2_g"], p["ln2_b"])
        x3 = _layer_norm(
            x2 + mha(x2, eb, p["c_wq"], p["c_wk"], p["c_wv"], p["c_wo"]),
            p["ln3_g"], p["ln3_b"])
        h = jax.nn.gelu(x3 @ p["w1"], approximate=False)
        return x3 + h @ p["w2"]

    return jax.vmap(one)(x, enc)


if __name__ == "__main__":
    key = jax.random.PRNGKey(0)
    ks = jax.random.split(key, 13)
    D, F = MODEL_DIM, DIM_FF
    g_lin = 1.0                # nn.init.calculate_gain('linear')
    g_relu = math.sqrt(2.0)    # nn.init.calculate_gain('relu') (wt_init_ default)

    params = {
        "mask": jnp.tril(jnp.ones((SEQ, SEQ), jnp.float32)),
        "ln1_g": jnp.ones((1, D), jnp.float32), "ln1_b": jnp.zeros((1, D), jnp.float32),
        "ln2_g": jnp.ones((1, D), jnp.float32), "ln2_b": jnp.zeros((1, D), jnp.float32),
        "ln3_g": jnp.ones((1, D), jnp.float32), "ln3_b": jnp.zeros((1, D), jnp.float32),
        # attention projections stored as (in, out) = W_pytorch.T; biases are zero
        "s_wq": orthogonal(ks[0], D, D, g_lin).T,
        "s_wk": orthogonal(ks[1], D, D, g_lin).T,
        "s_wv": orthogonal(ks[2], D, D, g_lin).T,
        "s_wo": orthogonal(ks[3], D, D, g_lin).T,
        "c_wq": orthogonal(ks[4], D, D, g_lin).T,
        "c_wk": orthogonal(ks[5], D, D, g_lin).T,
        "c_wv": orthogonal(ks[6], D, D, g_lin).T,
        "c_wo": orthogonal(ks[7], D, D, g_lin).T,
        # FF_MLP weights
        "w1": orthogonal(ks[8], F, D, g_relu).T,   # (D, F)
        "w2": orthogonal(ks[9], D, F, g_relu).T,   # (F, D)
    }
    prep = prepare_params(params)   # one-time packing; not in the per-forward path

    x = jax.random.normal(ks[10], (BATCH, SEQ, D), dtype=jnp.float32)
    enc = jax.random.normal(ks[11], (BATCH, SEQ, D), dtype=jnp.float32)

    out = jax.block_until_ready(gpt_layer(x, enc, prep))
    ref = ref_forward(x, enc, params)

    assert out.shape == (BATCH, SEQ, D)
    # 2e-2 tolerance: bf16 MXU operands (review-requested) vs. the f32 reference.
    assert jnp.allclose(out, ref, atol=2e-2, rtol=2e-2), float(jnp.max(jnp.abs(out - ref)))
    print("KERNEL_OK")
</pallas_src>

<mosaic_0001>
module attributes {stable_mosaic.version = 11 : i64} {
  func.func @gpt_layer_kernel(%arg0: memref<16x32xf32, #tpu.memory_space<vmem>>, %arg1: memref<16x32xf32, #tpu.memory_space<vmem>>, %arg2: memref<64x16xf32, #tpu.memory_space<vmem>>, %arg3: memref<64x32xf32, #tpu.memory_space<vmem>>, %arg4: memref<6x32xf32, #tpu.memory_space<vmem>>, %arg5: memref<256x32xbf16, #tpu.memory_space<vmem>>, %arg6: memref<32x64xbf16, #tpu.memory_space<vmem>>, %arg7: memref<64x32xbf16, #tpu.memory_space<vmem>>, %arg8: memref<16x32xf32, #tpu.memory_space<vmem>>) attributes {dimension_semantics = [], scalar_prefetch = 0 : i64, scratch_operands = 0 : i64, tpu.core_type = #tpu.core_type<tc>} {
    %c0 = arith.constant 0 : index
    %c0_0 = arith.constant 0 : index
    %0 = vector.load %arg0[%c0, %c0_0] : memref<16x32xf32, #tpu.memory_space<vmem>>, vector<16x32xf32>
    %c0_1 = arith.constant 0 : index
    %c0_2 = arith.constant 0 : index
    %1 = vector.load %arg1[%c0_1, %c0_2] : memref<16x32xf32, #tpu.memory_space<vmem>>, vector<16x32xf32>
    %c0_3 = arith.constant 0 : index
    %c0_4 = arith.constant 0 : index
    %2 = vector.load %arg2[%c0_3, %c0_4] : memref<64x16xf32, #tpu.memory_space<vmem>>, vector<64x16xf32>
    %c0_5 = arith.constant 0 : index
    %c0_6 = arith.constant 0 : index
    %3 = vector.load %arg3[%c0_5, %c0_6] : memref<64x32xf32, #tpu.memory_space<vmem>>, vector<64x32xf32>
    %c0_7 = arith.constant 0 : index
    %c0_8 = arith.constant 0 : index
    %4 = vector.load %arg4[%c0_7, %c0_8] : memref<6x32xf32, #tpu.memory_space<vmem>>, vector<6x32xf32>
    %c0_9 = arith.constant 0 : index
    %c0_10 = arith.constant 0 : index
    %5 = vector.load %arg5[%c0_9, %c0_10] : memref<256x32xbf16, #tpu.memory_space<vmem>>, vector<256x32xbf16>
    %6 = vector.extract_strided_slice %4 {offsets = [0, 0], sizes = [1, 32], strides = [1, 1]} : vector<6x32xf32> to vector<1x32xf32>
    %7 = vector.extract_strided_slice %4 {offsets = [1, 0], sizes = [1, 32], strides = [1, 1]} : vector<6x32xf32> to vector<1x32xf32>
    %cst = arith.constant dense<0.000000e+00> : vector<16xf32>
    %8 = vector.multi_reduction <add>, %0, %cst [1] : vector<16x32xf32> to vector<16xf32>
    %9 = vector.shape_cast %8 : vector<16xf32> to vector<16x1xf32>
    %cst_11 = arith.constant 3.200000e+01 : f32
    %10 = vector.broadcast %cst_11 : f32 to vector<16x1xf32>
    %11 = arith.divf %9, %10 : vector<16x1xf32>
    %12 = vector.broadcast %11 : vector<16x1xf32> to vector<16x32xf32>
    %13 = arith.subf %0, %12 : vector<16x32xf32>
    %14 = arith.mulf %13, %13 : vector<16x32xf32>
    %cst_12 = arith.constant dense<0.000000e+00> : vector<16xf32>
    %15 = vector.multi_reduction <add>, %14, %cst_12 [1] : vector<16x32xf32> to vector<16xf32>
    %16 = vector.shape_cast %15 : vector<16xf32> to vector<16x1xf32>
    %cst_13 = arith.constant 3.200000e+01 : f32
    %17 = vector.broadcast %cst_13 : f32 to vector<16x1xf32>
    %18 = arith.divf %16, %17 : vector<16x1xf32>
    %cst_14 = arith.constant 9.99999974E-6 : f32
    %19 = vector.broadcast %cst_14 : f32 to vector<16x1xf32>
    %20 = arith.addf %18, %19 : vector<16x1xf32>
    %21 = math.rsqrt %20 : vector<16x1xf32>
    %22 = vector.broadcast %21 : vector<16x1xf32> to vector<16x32xf32>
    %23 = arith.mulf %13, %22 : vector<16x32xf32>
    %24 = vector.broadcast %6 : vector<1x32xf32> to vector<16x32xf32>
    %25 = arith.mulf %23, %24 : vector<16x32xf32>
    %26 = vector.broadcast %7 : vector<1x32xf32> to vector<16x32xf32>
    %27 = arith.addf %25, %26 : vector<16x32xf32>
    %28 = vector.extract_strided_slice %5 {offsets = [0, 0], sizes = [32, 32], strides = [1, 1]} : vector<256x32xbf16> to vector<32x32xbf16>
    %29 = vector.extract_strided_slice %5 {offsets = [32, 0], sizes = [32, 32], strides = [1, 1]} : vector<256x32xbf16> to vector<32x32xbf16>
    %30 = vector.extract_strided_slice %5 {offsets = [64, 0], sizes = [32, 32], strides = [1, 1]} : vector<256x32xbf16> to vector<32x32xbf16>
    %31 = vector.extract_strided_slice %5 {offsets = [96, 0], sizes = [32, 32], strides = [1, 1]} : vector<256x32xbf16> to vector<32x32xbf16>
    %32 = arith.truncf %27 : vector<16x32xf32> to vector<16x32xbf16>
    %cst_15 = arith.constant dense<0.000000e+00> : vector<16x32xf32>
    %33 = tpu.matmul %32, %28, %cst_15 {dimension_numbers = #tpu.dot_dimension_numbers<[1], [0], [0], [1], [0, 0, 1, 1], [], []>} : vector<16x32xbf16>, vector<32x32xbf16>, vector<16x32xf32> -> vector<16x32xf32>
    %34 = tpu.concatenate %33, %33, %33, %33 in 0 : vector<16x32xf32>, vector<16x32xf32>, vector<16x32xf32>, vector<16x32xf32> -> vector<64x32xf32>
    %35 = arith.mulf %34, %3 : vector<64x32xf32>
    %36 = arith.truncf %35 : vector<64x32xf32> to vector<64x32xbf16>
    %37 = arith.truncf %27 : vector<16x32xf32> to vector<16x32xbf16>
    %cst_16 = arith.constant dense<0.000000e+00> : vector<16x32xf32>
    %38 = tpu.matmul %37, %29, %cst_16 {dimension_numbers = #tpu.dot_dimension_numbers<[1], [0], [0], [1], [0, 0, 1, 1], [], []>} : vector<16x32xbf16>, vector<32x32xbf16>, vector<16x32xf32> -> vector<16x32xf32>
    %39 = arith.truncf %38 : vector<16x32xf32> to vector<16x32xbf16>
    %cst_17 = arith.constant dense<0.000000e+00> : vector<16x32xf32>
    %40 = tpu.matmul %37, %30, %cst_17 {dimension_numbers = #tpu.dot_dimension_numbers<[1], [0], [0], [1], [0, 0, 1, 1], [], []>} : vector<16x32xbf16>, vector<32x32xbf16>, vector<16x32xf32> -> vector<16x32xf32>
    %41 = arith.truncf %40 : vector<16x32xf32> to vector<16x32xbf16>
    %cst_18 = arith.constant dense<0.000000e+00> : vector<64x16xf32>
    %42 = tpu.matmul %36, %39, %cst_18 {dimension_numbers = #tpu.dot_dimension_numbers<[1], [1], [0], [0], [0, 0, 1, 0], [], []>} : vector<64x32xbf16>, vector<16x32xbf16>, vector<64x16xf32> -> vector<64x16xf32>
    %43 = arith.addf %42, %2 : vector<64x16xf32>
    %cst_19 = arith.constant dense<0xFF800000> : vector<64xf32>
    %44 = vector.multi_reduction <maximumf>, %43, %cst_19 [1] : vector<64x16xf32> to vector<64xf32>
    %45 = vector.shape_cast %44 : vector<64xf32> to vector<64x1xf32>
    %46 = vector.broadcast %45 : vector<64x1xf32> to vector<64x16xf32>
    %47 = arith.subf %43, %46 : vector<64x16xf32>
    %48 = math.exp %47 : vector<64x16xf32>
    %cst_20 = arith.constant dense<0.000000e+00> : vector<64xf32>
    %49 = vector.multi_reduction <add>, %48, %cst_20 [1] : vector<64x16xf32> to vector<64xf32>
    %50 = vector.shape_cast %49 : vector<64xf32> to vector<64x1xf32>
    %51 = tpu.reciprocal %50 {approx = true} : vector<64x1xf32> -> vector<64x1xf32>
    %52 = vector.broadcast %51 : vector<64x1xf32> to vector<64x16xf32>
    %53 = arith.mulf %48, %52 : vector<64x16xf32>
    %54 = arith.truncf %53 : vector<64x16xf32> to vector<64x16xbf16>
    %cst_21 = arith.constant dense<0.000000e+00> : vector<64x32xf32>
    %55 = tpu.matmul %54, %41, %cst_21 {dimension_numbers = #tpu.dot_dimension_numbers<[1], [0], [0], [1], [0, 0, 1, 1], [], []>} : vector<64x16xbf16>, vector<16x32xbf16>, vector<64x32xf32> -> vector<64x32xf32>
    %56 = arith.mulf %55, %3 : vector<64x32xf32>
    %57 = vector.shape_cast %56 : vector<64x32xf32> to vector<4x16x32xf32>
    %cst_22 = arith.constant dense<0.000000e+00> : vector<16x32xf32>
    %58 = vector.multi_reduction <add>, %57, %cst_22 [0] : vector<4x16x32xf32> to vector<16x32xf32>
    %59 = arith.truncf %58 : vector<16x32xf32> to vector<16x32xbf16>
    %cst_23 = arith.constant dense<0.000000e+00> : vector<16x32xf32>
    %60 = tpu.matmul %59, %31, %cst_23 {dimension_numbers = #tpu.dot_dimension_numbers<[1], [0], [0], [1], [0, 0, 1, 1], [], []>} : vector<16x32xbf16>, vector<32x32xbf16>, vector<16x32xf32> -> vector<16x32xf32>
    %61 = arith.addf %27, %60 : vector<16x32xf32>
    %62 = vector.extract_strided_slice %4 {offsets = [2, 0], sizes = [1, 32], strides = [1, 1]} : vector<6x32xf32> to vector<1x32xf32>
    %63 = vector.extract_strided_slice %4 {offsets = [3, 0], sizes = [1, 32], strides = [1, 1]} : vector<6x32xf32> to vector<1x32xf32>
    %cst_24 = arith.constant dense<0.000000e+00> : vector<16xf32>
    %64 = vector.multi_reduction <add>, %61, %cst_24 [1] : vector<16x32xf32> to vector<16xf32>
    %65 = vector.shape_cast %64 : vector<16xf32> to vector<16x1xf32>
    %cst_25 = arith.constant 3.200000e+01 : f32
    %66 = vector.broadcast %cst_25 : f32 to vector<16x1xf32>
    %67 = arith.divf %65, %66 : vector<16x1xf32>
    %68 = vector.broadcast %67 : vector<16x1xf32> to vector<16x32xf32>
    %69 = arith.subf %61, %68 : vector<16x32xf32>
    %70 = arith.mulf %69, %69 : vector<16x32xf32>
    %cst_26 = arith.constant dense<0.000000e+00> : vector<16xf32>
    %71 = vector.multi_reduction <add>, %70, %cst_26 [1] : vector<16x32xf32> to vector<16xf32>
    %72 = vector.shape_cast %71 : vector<16xf32> to vector<16x1xf32>
    %cst_27 = arith.constant 3.200000e+01 : f32
    %73 = vector.broadcast %cst_27 : f32 to vector<16x1xf32>
    %74 = arith.divf %72, %73 : vector<16x1xf32>
    %cst_28 = arith.constant 9.99999974E-6 : f32
    %75 = vector.broadcast %cst_28 : f32 to vector<16x1xf32>
    %76 = arith.addf %74, %75 : vector<16x1xf32>
    %77 = math.rsqrt %76 : vector<16x1xf32>
    %78 = vector.broadcast %77 : vector<16x1xf32> to vector<16x32xf32>
    %79 = arith.mulf %69, %78 : vector<16x32xf32>
    %80 = vector.broadcast %62 : vector<1x32xf32> to vector<16x32xf32>
    %81 = arith.mulf %79, %80 : vector<16x32xf32>
    %82 = vector.broadcast %63 : vector<1x32xf32> to vector<16x32xf32>
    %83 = arith.addf %81, %82 : vector<16x32xf32>
    %84 = vector.extract_strided_slice %5 {offsets = [128, 0], sizes = [32, 32], strides = [1, 1]} : vector<256x32xbf16> to vector<32x32xbf16>
    %85 = vector.extract_strided_slice %5 {offsets = [160, 0], sizes = [32, 32], strides = [1, 1]} : vector<256x32xbf16> to vector<32x32xbf16>
    %86 = vector.extract_strided_slice %5 {offsets = [192, 0], sizes = [32, 32], strides = [1, 1]} : vector<256x32xbf16> to vector<32x32xbf16>
    %87 = vector.extract_strided_slice %5 {offsets = [224, 0], sizes = [32, 32], strides = [1, 1]} : vector<256x32xbf16> to vector<32x32xbf16>
    %88 = arith.truncf %83 : vector<16x32xf32> to vector<16x32xbf16>
    %cst_29 = arith.constant dense<0.000000e+00> : vector<16x32xf32>
    %89 = tpu.matmul %88, %84, %cst_29 {dimension_numbers = #tpu.dot_dimension_numbers<[1], [0], [0], [1], [0, 0, 1, 1], [], []>} : vector<16x32xbf16>, vector<32x32xbf16>, vector<16x32xf32> -> vector<16x32xf32>
    %90 = tpu.concatenate %89, %89, %89, %89 in 0 : vector<16x32xf32>, vector<16x32xf32>, vector<16x32xf32>, vector<16x32xf32> -> vector<64x32xf32>
    %91 = arith.mulf %90, %3 : vector<64x32xf32>
    %92 = arith.truncf %91 : vector<64x32xf32> to vector<64x32xbf16>
    %93 = arith.truncf %1 : vector<16x32xf32> to vector<16x32xbf16>
    %cst_30 = arith.constant dense<0.000000e+00> : vector<16x32xf32>
    %94 = tpu.matmul %93, %85, %cst_30 {dimension_numbers = #tpu.dot_dimension_numbers<[1], [0], [0], [1], [0, 0, 1, 1], [], []>} : vector<16x32xbf16>, vector<32x32xbf16>, vector<16x32xf32> -> vector<16x32xf32>
    %95 = arith.truncf %94 : vector<16x32xf32> to vector<16x32xbf16>
    %cst_31 = arith.constant dense<0.000000e+00> : vector<16x32xf32>
    %96 = tpu.matmul %93, %86, %cst_31 {dimension_numbers = #tpu.dot_dimension_numbers<[1], [0], [0], [1], [0, 0, 1, 1], [], []>} : vector<16x32xbf16>, vector<32x32xbf16>, vector<16x32xf32> -> vector<16x32xf32>
    %97 = arith.truncf %96 : vector<16x32xf32> to vector<16x32xbf16>
    %cst_32 = arith.constant dense<0.000000e+00> : vector<64x16xf32>
    %98 = tpu.matmul %92, %95, %cst_32 {dimension_numbers = #tpu.dot_dimension_numbers<[1], [1], [0], [0], [0, 0, 1, 0], [], []>} : vector<64x32xbf16>, vector<16x32xbf16>, vector<64x16xf32> -> vector<64x16xf32>
    %99 = arith.addf %98, %2 : vector<64x16xf32>
    %cst_33 = arith.constant dense<0xFF800000> : vector<64xf32>
    %100 = vector.multi_reduction <maximumf>, %99, %cst_33 [1] : vector<64x16xf32> to vector<64xf32>
    %101 = vector.shape_cast %100 : vector<64xf32> to vector<64x1xf32>
    %102 = vector.broadcast %101 : vector<64x1xf32> to vector<64x16xf32>
    %103 = arith.subf %99, %102 : vector<64x16xf32>
    %104 = math.exp %103 : vector<64x16xf32>
    %cst_34 = arith.constant dense<0.000000e+00> : vector<64xf32>
    %105 = vector.multi_reduction <add>, %104, %cst_34 [1] : vector<64x16xf32> to vector<64xf32>
    %106 = vector.shape_cast %105 : vector<64xf32> to vector<64x1xf32>
    %107 = tpu.reciprocal %106 {approx = true} : vector<64x1xf32> -> vector<64x1xf32>
    %108 = vector.broadcast %107 : vector<64x1xf32> to vector<64x16xf32>
    %109 = arith.mulf %104, %108 : vector<64x16xf32>
    %110 = arith.truncf %109 : vector<64x16xf32> to vector<64x16xbf16>
    %cst_35 = arith.constant dense<0.000000e+00> : vector<64x32xf32>
    %111 = tpu.matmul %110, %97, %cst_35 {dimension_numbers = #tpu.dot_dimension_numbers<[1], [0], [0], [1], [0, 0, 1, 1], [], []>} : vector<64x16xbf16>, vector<16x32xbf16>, vector<64x32xf32> -> vector<64x32xf32>
    %112 = arith.mulf %111, %3 : vector<64x32xf32>
    %113 = vector.shape_cast %112 : vector<64x32xf32> to vector<4x16x32xf32>
    %cst_36 = arith.constant dense<0.000000e+00> : vector<16x32xf32>
    %114 = vector.multi_reduction <add>, %113, %cst_36 [0] : vector<4x16x32xf32> to vector<16x32xf32>
    %115 = arith.truncf %114 : vector<16x32xf32> to vector<16x32xbf16>
    %cst_37 = arith.constant dense<0.000000e+00> : vector<16x32xf32>
    %116 = tpu.matmul %115, %87, %cst_37 {dimension_numbers = #tpu.dot_dimension_numbers<[1], [0], [0], [1], [0, 0, 1, 1], [], []>} : vector<16x32xbf16>, vector<32x32xbf16>, vector<16x32xf32> -> vector<16x32xf32>
    %117 = arith.addf %83, %116 : vector<16x32xf32>
    %118 = vector.extract_strided_slice %4 {offsets = [4, 0], sizes = [1, 32], strides = [1, 1]} : vector<6x32xf32> to vector<1x32xf32>
    %119 = vector.extract_strided_slice %4 {offsets = [5, 0], sizes = [1, 32], strides = [1, 1]} : vector<6x32xf32> to vector<1x32xf32>
    %cst_38 = arith.constant dense<0.000000e+00> : vector<16xf32>
    %120 = vector.multi_reduction <add>, %117, %cst_38 [1] : vector<16x32xf32> to vector<16xf32>
    %121 = vector.shape_cast %120 : vector<16xf32> to vector<16x1xf32>
    %cst_39 = arith.constant 3.200000e+01 : f32
    %122 = vector.broadcast %cst_39 : f32 to vector<16x1xf32>
    %123 = arith.divf %121, %122 : vector<16x1xf32>
    %124 = vector.broadcast %123 : vector<16x1xf32> to vector<16x32xf32>
    %125 = arith.subf %117, %124 : vector<16x32xf32>
    %126 = arith.mulf %125, %125 : vector<16x32xf32>
    %cst_40 = arith.constant dense<0.000000e+00> : vector<16xf32>
    %127 = vector.multi_reduction <add>, %126, %cst_40 [1] : vector<16x32xf32> to vector<16xf32>
    %128 = vector.shape_cast %127 : vector<16xf32> to vector<16x1xf32>
    %cst_41 = arith.constant 3.200000e+01 : f32
    %129 = vector.broadcast %cst_41 : f32 to vector<16x1xf32>
    %130 = arith.divf %128, %129 : vector<16x1xf32>
    %cst_42 = arith.constant 9.99999974E-6 : f32
    %131 = vector.broadcast %cst_42 : f32 to vector<16x1xf32>
    %132 = arith.addf %130, %131 : vector<16x1xf32>
    %133 = math.rsqrt %132 : vector<16x1xf32>
    %134 = vector.broadcast %133 : vector<16x1xf32> to vector<16x32xf32>
    %135 = arith.mulf %125, %134 : vector<16x32xf32>
    %136 = vector.broadcast %118 : vector<1x32xf32> to vector<16x32xf32>
    %137 = arith.mulf %135, %136 : vector<16x32xf32>
    %138 = vector.broadcast %119 : vector<1x32xf32> to vector<16x32xf32>
    %139 = arith.addf %137, %138 : vector<16x32xf32>
    %140 = arith.truncf %139 : vector<16x32xf32> to vector<16x32xbf16>
    %c0_43 = arith.constant 0 : index
    %c0_44 = arith.constant 0 : index
    %141 = vector.load %arg6[%c0_43, %c0_44] : memref<32x64xbf16, #tpu.memory_space<vmem>>, vector<32x64xbf16>
    %cst_45 = arith.constant dense<0.000000e+00> : vector<16x64xf32>
    %142 = tpu.matmul %140, %141, %cst_45 {dimension_numbers = #tpu.dot_dimension_numbers<[1], [0], [0], [1], [0, 0, 1, 1], [], []>} : vector<16x32xbf16>, vector<32x64xbf16>, vector<16x64xf32> -> vector<16x64xf32>
    %cst_46 = arith.constant 0.707106769 : f32
    %143 = vector.broadcast %cst_46 : f32 to vector<16x64xf32>
    %144 = arith.mulf %142, %143 : vector<16x64xf32>
    %145 = math.absf %144 : vector<16x64xf32>
    %cst_47 = arith.constant 0.327591091 : f32
    %146 = vector.broadcast %cst_47 : f32 to vector<16x64xf32>
    %147 = arith.mulf %146, %145 : vector<16x64xf32>
    %cst_48 = arith.constant 1.000000e+00 : f32
    %148 = vector.broadcast %cst_48 : f32 to vector<16x64xf32>
    %149 = arith.addf %148, %147 : vector<16x64xf32>
    %cst_49 = arith.constant 1.000000e+00 : f32
    %150 = vector.broadcast %cst_49 : f32 to vector<16x64xf32>
    %151 = arith.divf %150, %149 : vector<16x64xf32>
    %cst_50 = arith.constant 1.06140542 : f32
    %152 = vector.broadcast %cst_50 : f32 to vector<16x64xf32>
    %153 = arith.mulf %151, %152 : vector<16x64xf32>
    %cst_51 = arith.constant -1.45315206 : f32
    %154 = vector.broadcast %cst_51 : f32 to vector<16x64xf32>
    %155 = arith.addf %154, %153 : vector<16x64xf32>
    %156 = arith.mulf %151, %155 : vector<16x64xf32>
    %cst_52 = arith.constant 1.42141378 : f32
    %157 = vector.broadcast %cst_52 : f32 to vector<16x64xf32>
    %158 = arith.addf %157, %156 : vector<16x64xf32>
    %159 = arith.mulf %151, %158 : vector<16x64xf32>
    %cst_53 = arith.constant -0.284496725 : f32
    %160 = vector.broadcast %cst_53 : f32 to vector<16x64xf32>
    %161 = arith.addf %160, %159 : vector<16x64xf32>
    %162 = arith.mulf %151, %161 : vector<16x64xf32>
    %cst_54 = arith.constant 0.254829586 : f32
    %163 = vector.broadcast %cst_54 : f32 to vector<16x64xf32>
    %164 = arith.addf %163, %162 : vector<16x64xf32>
    %165 = arith.mulf %151, %164 : vector<16x64xf32>
    %cst_55 = arith.constant 0.000000e+00 : f32
    %166 = vector.broadcast %cst_55 : f32 to vector<16x64xf32>
    %167 = arith.subf %166, %145 : vector<16x64xf32>
    %168 = arith.mulf %167, %145 : vector<16x64xf32>
    %169 = math.exp %168 : vector<16x64xf32>
    %170 = arith.mulf %165, %169 : vector<16x64xf32>
    %cst_56 = arith.constant 1.000000e+00 : f32
    %171 = vector.broadcast %cst_56 : f32 to vector<16x64xf32>
    %172 = arith.subf %171, %170 : vector<16x64xf32>
    %cst_57 = arith.constant 0.000000e+00 : f32
    %173 = vector.broadcast %cst_57 : f32 to vector<16x64xf32>
    %174 = arith.cmpf oge, %144, %173 : vector<16x64xf32>
    %cst_58 = arith.constant 0.000000e+00 : f32
    %175 = vector.broadcast %cst_58 : f32 to vector<16x64xf32>
    %176 = arith.subf %175, %172 : vector<16x64xf32>
    %177 = arith.select %174, %172, %176 : vector<16x64xi1>, vector<16x64xf32>
    %cst_59 = arith.constant 5.000000e-01 : f32
    %178 = vector.broadcast %cst_59 : f32 to vector<16x64xf32>
    %179 = arith.mulf %178, %142 : vector<16x64xf32>
    %cst_60 = arith.constant 1.000000e+00 : f32
    %180 = vector.broadcast %cst_60 : f32 to vector<16x64xf32>
    %181 = arith.addf %180, %177 : vector<16x64xf32>
    %182 = arith.mulf %179, %181 : vector<16x64xf32>
    %183 = arith.truncf %182 : vector<16x64xf32> to vector<16x64xbf16>
    %c0_61 = arith.constant 0 : index
    %c0_62 = arith.constant 0 : index
    %184 = vector.load %arg7[%c0_61, %c0_62] : memref<64x32xbf16, #tpu.memory_space<vmem>>, vector<64x32xbf16>
    %cst_63 = arith.constant dense<0.000000e+00> : vector<16x32xf32>
    %185 = tpu.matmul %183, %184, %cst_63 {dimension_numbers = #tpu.dot_dimension_numbers<[1], [0], [0], [1], [0, 0, 1, 1], [], []>} : vector<16x64xbf16>, vector<64x32xbf16>, vector<16x32xf32> -> vector<16x32xf32>
    %186 = arith.addf %139, %185 : vector<16x32xf32>
    %c0_64 = arith.constant 0 : index
    %c0_65 = arith.constant 0 : index
    %187 = vector.load %arg8[%c0_64, %c0_65] : memref<16x32xf32, #tpu.memory_space<vmem>>, vector<16x32xf32>
    tpu.vector_store %arg8[%c0_64, %c0_65], %186 {strides = array<i32>} : memref<16x32xf32, #tpu.memory_space<vmem>>, vector<16x32xf32>,
    return
  }
}

</mosaic_0001>

<bundles_post_ra>
// kernel: tpu_custom_call.1
= control target key start
LH: loop header
LB: loop body
LE: loop exit
PB: predicated region body
PF: predicated region fallthrough
CT: control target
= control target key end

     0   :  { %vm84_vm0 = vcmask 261120   ;;  %s2243_s0 = inlined_call_operand.vmem [shape: f32[16,32], index: 0, kind: input, shape index: {}]   ;;  %s2244_s1 = inlined_call_operand.vmem [shape: f32[16,32], index: 1, kind: input, shape index: {}]   ;;  %s2245_s2 = inlined_call_operand.vmem [shape: f32[64,16], index: 2, kind: input, shape index: {}]   ;;  %s2246_s3 = inlined_call_operand.vmem [shape: f32[64,32], index: 3, kind: input, shape index: {}]   ;;  %s2247_s4 = inlined_call_operand.vmem [shape: f32[6,32], index: 4, kind: input, shape index: {}]   ;;  %s2248_s5 = inlined_call_operand.vmem [shape: bf16[256,32], index: 5, kind: input, shape index: {}]   ;;  %s2249_s6 = inlined_call_operand.vmem [shape: bf16[32,64], index: 6, kind: input, shape index: {}]   ;;  %s2250_s7 = inlined_call_operand.vmem [shape: bf16[64,32], index: 7, kind: input, shape index: {}]   ;;  %s2251_s8 = inlined_call_operand.hbm [shape: f32[16,32], index: 8, kind: output, shape index: {}]  }
   0x1   :  { %v31_v0 = vld [vmem:[%s2243_s0] sm:$0xff]  ;;  %v32_v1 = vld [vmem:[%s2243_s0 + $0x8] sm:$0xff] }
   0x2   :  { %v85_v2 = vsel %vm84_vm0, %v31_v0, 0.0  ;;  %v88_v3 = vsel %vm84_vm0, %v32_v1, 0.0 }
   0x3   :  { %86 = vadd.xlane.f32.xlu0 %v85_v2 }
   0x7   :  { %89 = vadd.xlane.f32.xlu0 %v88_v3 }
   0x8   :  { %13 = vsyncpa [#allocation3], 0  ;;  %v1663_v14 = vld [vmem:[%s2248_s5] sm:$0xff]   ;;  %v1664_v15 = vld [vmem:[%s2248_s5 + $0x10] sm:$0xff]   ;;  %v1794_v16 = vmov 0.0   ;;  %vm1795_vm1 = vmmov 0   ;;  %v112_v23 = vlaneseq }
   0x9   :  { %1532 = vmatprep.subr.bf16.mxu0 %v1794_v16  ;;  %1540 = vmatprep.subr.bf16.mxu1 %v1794_v16  ;;  %v1665_v17 = vld [vmem:[%s2248_s5 + $0x8] sm:$0xff]   ;;  %v1666_v18 = vld [vmem:[%s2248_s5 + $0x18] sm:$0xff]   ;;  %v1881_v28 = vld [vmem:[%s2247_s4] sm:$0x3f]  ;;  %vm381_vm2 = vcmask 130048   ;;  %vm1367_vm5 = vcmask 523264  }
   0xa   :  { %1533 = vmatpush3.bf16.msra.mxu0 %v1663_v14  ;;  %1541 = vmatpush3.bf16.msra.mxu1 %v1664_v15  ;;  %v1875_v26 = vshrl.u32 %v112_v23, 7  ;;  %v1667_v40 = vld [vmem:[%s2248_s5 + $0x20] sm:$0xff]   ;;  %v1668_v42 = vld [vmem:[%s2248_s5 + $0x28] sm:$0xff]   ;;  %v1912_v44 = vld [vmem:[%s2246_s3 + $0x10] sm:$0xff] }
   0xb   :  { %1534 = vmatprep.subr.bf16.mxu0 %v1794_v16  ;;  %1542 = vmatprep.subr.bf16.mxu1 %v1794_v16  ;;  %v1907_v43 = vld [vmem:[%s2246_s3] sm:$0xff]  ;;  %v1922_v46 = vld [vmem:[%s2246_s3 + $0x30] sm:$0xff]  ;;  %v1927_v47 = vld [vmem:[%s2246_s3 + $0x8] sm:$0xff] }
   0xc   :  { %1536 = vmatprep.mubr.msk.bf16.mxu0 %vm1795_vm1, %v1794_v16  ;;  %1544 = vmatprep.mubr.msk.bf16.mxu1 %vm1795_vm1, %v1794_v16  ;;  %v114_v27 = vsub.s32 0, %v1875_v26  ;;  %v120_v32 = vsub.s32 1, %v1875_v26  ;;  %v1917_v45 = vld [vmem:[%s2246_s3 + $0x20] sm:$0xff]  ;;  %v1932_v50 = vld [vmem:[%s2246_s3 + $0x18] sm:$0xff]  ;;  %v1937_v51 = vld [vmem:[%s2246_s3 + $0x28] sm:$0xff] }
   0xd   :  { %v1942_v52 = vld [vmem:[%s2246_s3 + $0x38] sm:$0xff]  ;;  %v1965_v14 = vld [vmem:[%s2245_s2] sm:$0xff] }
   0xe   :  { %1535 = vmatpush3.bf16.msra.mxu0 %v1665_v17  ;;  %1543 = vmatpush3.bf16.msra.mxu1 %v1666_v18  ;;  %v115_v31 = vrot.slane %v1881_v28, %v114_v27  ;;  %v121_v36 = vrot.slane %v1881_v28, %v120_v32  ;;  %v1970_v17 = vld [vmem:[%s2245_s2 + $0x10] sm:$0xff] }
   0xf   :  { %1548 = vmatprep.subr.bf16.mxu0 %v1794_v16 }
  0x90   :  { %v87_v4 = vpop.xlane.xlu0 %86 }
  0x91   :  { %v92_v5 = vmul.f32 0.03125, %v87_v4 }
  0x93   :  { %v94_v6 = vsub.f32 %v31_v0, %v92_v5 }
  0x94   :  { %v90_v7 = vpop.xlane.xlu0 %89 }
  0x95   :  { %v93_v8 = vmul.f32 0.03125, %v90_v7  ;;  %v96_v9 = vmul.f32 %v94_v6, %v94_v6 }
  0x97   :  { %v95_v10 = vsub.f32 %v32_v1, %v93_v8  ;;  %v98_v11 = vsel %vm84_vm0, %v96_v9, 0.0 }
  0x98   :  { %99 = vadd.xlane.f32.xlu1 %v98_v11 }
  0x99   :  { %v97_v12 = vmul.f32 %v95_v10, %v95_v10 }
  0x9b   :  { %v101_v13 = vsel %vm84_vm0, %v97_v12, 0.0 }
  0x9c   :  { %102 = vadd.xlane.f32.xlu1 %v101_v13 }
 0x125   :  { %v100_v19 = vpop.xlane.xlu1 %99 }
 0x126   :  { %v104_v20 = vmul.f32 0.03125, %v100_v19  ;;  %v1975_v19 = vld [vmem:[%s2245_s2 + $0x8] sm:$0xff] }
 0x128   :  { %v106_v21 = vadd.f32 1e-05, %v104_v20 }
 0x129   :  { %v103_v22 = vpop.xlane.xlu1 %102 }
 0x12a   :  { %1685 = vrsqrt.f32 %v106_v21  ;;  %v105_v24 = vmul.f32 0.03125, %v103_v22  ;;  %v1981_v22 = vld [vmem:[%s2245_s2 + $0x18] sm:$0xff] }
 0x12c   :  { %v107_v25 = vadd.f32 1e-05, %v105_v24 }
 0x12e   :  { %1687 = vrsqrt.f32 %v107_v25 }
 0x134   :  { %v1686_v29 = vpop.eup %1685 }
 0x135   :  { %v110_v30 = vmul.f32 %v1686_v29, %v94_v6 }
 0x137   :  { %v116_v35 = vmul.f32 %v115_v31, %v110_v30 }
 0x138   :  { %v1688_v33 = vpop.eup %1687 }
 0x139   :  { %v111_v34 = vmul.f32 %v1688_v33, %v95_v10  ;;  %v1886_v38 = vadd.f32 %v121_v36, %v116_v35 }
 0x13b   :  { %v117_v37 = vmul.f32 %v115_v31, %v111_v34  ;;  %v1991_v31 = vld [vmem:[%s2245_s2 + $0x20] sm:$0xff]  ;;  %v1997_v34 = vld [vmem:[%s2245_s2 + $0x30] sm:$0xff] }
 0x13d   :  { %v1888_v39 = vadd.f32 %v121_v36, %v117_v37  ;;  %v2002_v36 = vld [vmem:[%s2245_s2 + $0x28] sm:$0xff] }
 0x13f   :  { %v124_v41 = vpack.c.bf16 %v1888_v39, %v1886_v38 }
 0x141   :  { %1537 = vmatmul.mubr.msk.bf16.vlgmr.msra.gmra.mrb[0].mxu0 %vm84_vm0, %v124_v41  ;;  %1545 = vmatmul.mubr.msk.bf16.vlgmr.msra.gmra.mrb[0].mxu1 %vm84_vm0, %v124_v41 }
 0x142   :  { %1549 = vmatpush3.bf16.msra.mxu0 %v1667_v40  ;;  %1552 = vmatprep.mubr.msk.bf16.mxu0 %vm1795_vm1, %v1794_v16 }
 0x143   :  { %1550 = vmatprep.subr.bf16.mxu0 %v1794_v16 }
 0x146   :  { %1551 = vmatpush3.bf16.msra.mxu0 %v1668_v42  ;;  %v2009_v42 = vld [vmem:[%s2245_s2 + $0x38] sm:$0xff] }
 0x149   :  { %1553 = vmatmul.mubr.msk.bf16.vlgmr.msra.gmra.mrb[4].mxu0 %vm84_vm0, %v124_v41 }
 0x214   :  { %v174_v48 = vpop.f32.mrb[0].mxu0  ;;  %v239_v49 = vpop.f32.mrb[0].mxu1 }
 0x215   :  { %v1538_v53 = vpop.f32.mrb[1].mxu0  ;;  %v1546_v54 = vpop.f32.mrb[1].mxu1  ;;  %v181_v55 = vmul.f32 %v174_v48, %v1907_v43  ;;  %v183_v56 = vmul.f32 %v174_v48, %v1912_v44  ;;  %v185_v57 = vmul.f32 %v174_v48, %v1917_v45  ;;  %v187_v58 = vmul.f32 %v174_v48, %v1922_v46 }
 0x216   :  { %v177_v59 = vpop.f32.mrb[2].mxu0  ;;  %v242_v60 = vpop.f32.mrb[2].mxu1 }
 0x217   :  { %v182_v61 = vmul.f32 %v177_v59, %v1927_v47  ;;  %v184_v62 = vmul.f32 %v177_v59, %v1932_v50  ;;  %v186_v63 = vmul.f32 %v177_v59, %v1937_v51  ;;  %v188_v0 = vmul.f32 %v177_v59, %v1942_v52  ;;  %v1539_v1 = vpop.f32.mrb[3].mxu0  ;;  %v1547_v2 = vpop.f32.mrb[3].mxu1 }
 0x218   :  { %v246_v3 = vpack.c.bf16 %v242_v60, %v239_v49 }
 0x219   :  { %v190_v4 = vpack.c.bf16 %v184_v62, %v183_v56  ;;  %v189_v5 = vpack.c.bf16 %v182_v61, %v181_v55  ;;  %v191_v6 = vpack.c.bf16 %v186_v63, %v185_v57  ;;  %v192_v7 = vpack.c.bf16 %v188_v0, %v187_v58 }
 0x21a   :  { %v314_v8 = vsel %vm84_vm0, %v246_v3, 0  ;;  %1656 = vmatprep.subr.msk.bf16.mxu1 %vm84_vm0, %v246_v3 }
 0x21b   :  { %1557 = vmatpush3.bf16.xpose.msra.mxu1 %v314_v8  ;;  %1558 = vmatprep.mubr.msk.bf16.mxu1 %vm84_vm0, %v189_v5 }
 0x21c   :  { %v293_v9 = vpop.f32.mrb[4].mxu0  ;;  %1576 = vmatprep.subr.bf16.mxu1 %v1794_v16 }
 0x21d   :  { %v1554_v10 = vpop.f32.mrb[5].mxu0 }
 0x21e   :  { %v296_v11 = vpop.f32.mrb[6].mxu0 }
 0x21f   :  { %v300_v12 = vpack.c.bf16 %v296_v11, %v293_v9  ;;  %v1555_v13 = vpop.f32.mrb[7].mxu0 }
 0x221   :  { %1566 = vmatprep.subr.bf16.mxu0 %v300_v12 }
 0x222   :  { %1559 = vmatmul.mubr.msk.bf16.vlgmr.msra.gmra.mrb[4].mxu1 %vm84_vm0, %v190_v4  ;;  %1567 = vmatpush3.bf16.msra.mxu0 %v300_v12 }
 0x223   :  { %1562 = vmatprep.mubr.msk.bf16.mxu1 %vm84_vm0, %v191_v6  ;;  %1584 = vmatprep.subr.bf16.mxu0 %v1794_v16 }
 0x22a   :  { %1563 = vmatmul.mubr.msk.bf16.gmra.mrb[8].mxu1 %vm84_vm0, %v192_v7 }
 0x22b   :  { %1580 = vmatprep.mubr.msk.bf16.mxu1 %vm1795_vm1, %v1794_v16 }
 0x2f5   :  { %v1560_v15 = vpop.f32.mrb[4].mxu1 }
 0x2f6   :  { %v350_v18 = vpop.f32.mrb[5].mxu1  ;;  %v359_v24 = vadd.f32 %v1560_v15, %v1970_v17 }
 0x2f7   :  { %v351_v20 = vadd.f32 %v350_v18, %v1965_v14  ;;  %v1561_v21 = vpop.f32.mrb[6].mxu1 }
 0x2f8   :  { %v353_v23 = vpop.f32.mrb[7].mxu1  ;;  %v362_v29 = vadd.f32 %v1561_v21, %v1981_v22  ;;  %v388_v33 = vsel %vm381_vm2, %v359_v24, -inf }
 0x2f9   :  { %v354_v25 = vadd.f32 %v353_v23, %v1975_v19  ;;  %v382_v27 = vsel %vm381_vm2, %v351_v20, -inf }
 0x2fa   :  { %383 = vmax.xlane.f32.xlu0 %v382_v27  ;;  %v391_v41 = vsel %vm381_vm2, %v362_v29, -inf }
 0x2fb   :  { %v385_v30 = vsel %vm381_vm2, %v354_v25, -inf }
 0x2fc   :  { %386 = vmax.xlane.f32.xlu1 %v385_v30 }
 0x2fd   :  { %v1564_v32 = vpop.f32.mrb[8].mxu1 }
 0x2fe   :  { %v366_v35 = vpop.f32.mrb[9].mxu1  ;;  %389 = vmax.xlane.f32.xlu0 %v388_v33  ;;  %v375_v49 = vadd.f32 %v1564_v32, %v1997_v34 }
 0x2ff   :  { %v367_v37 = vadd.f32 %v366_v35, %v1991_v31  ;;  %v1565_v40 = vpop.f32.mrb[10].mxu1 }
 0x300   :  { %v369_v48 = vpop.f32.mrb[11].mxu1  ;;  %392 = vmax.xlane.f32.xlu1 %v391_v41  ;;  %v378_v55 = vadd.f32 %v1565_v40, %v2009_v42  ;;  %v400_v57 = vsel %vm381_vm2, %v375_v49, -inf }
 0x301   :  { %v370_v53 = vadd.f32 %v369_v48, %v2002_v36  ;;  %v394_v54 = vsel %vm381_vm2, %v367_v37, -inf }
 0x302   :  { %395 = vmax.xlane.f32.xlu0 %v394_v54  ;;  %v403_v58 = vsel %vm381_vm2, %v378_v55, -inf }
 0x303   :  { %v397_v56 = vsel %vm381_vm2, %v370_v53, -inf }
 0x304   :  { %398 = vmax.xlane.f32.xlu1 %v397_v56 }
 0x306   :  { %401 = vmax.xlane.f32.xlu0 %v400_v57 }
 0x308   :  { %404 = vmax.xlane.f32.xlu1 %v403_v58 }
 0x387   :  { %v384_v59 = vpop.xlane.xlu0 %383 }
 0x388   :  { %v406_v60 = vsub.f32 %v351_v20, %v384_v59 }
 0x389   :  { %v387_v61 = vpop.xlane.xlu1 %386 }
 0x38a   :  { %v414_v62 = vmul.f32 1.442695, %v406_v60  ;;  %v407_v63 = vsub.f32 %v354_v25, %v387_v61 }
 0x38b   :  { %v390_v0 = vpop.xlane.xlu0 %389 }
 0x38c   :  { %1689 = vpow2.f32 %v414_v62  ;;  %v416_v1 = vmul.f32 1.442695, %v407_v63  ;;  %v408_v2 = vsub.f32 %v359_v24, %v390_v0 }
 0x38d   :  { %v393_v3 = vpop.xlane.xlu1 %392 }
 0x38e   :  { %1691 = vpow2.f32 %v416_v1  ;;  %v418_v4 = vmul.f32 1.442695, %v408_v2  ;;  %v409_v5 = vsub.f32 %v362_v29, %v393_v3 }
 0x38f   :  { %v396_v6 = vpop.xlane.xlu0 %395 }
 0x390   :  { %1693 = vpow2.f32 %v418_v4  ;;  %v420_v7 = vmul.f32 1.442695, %v409_v5  ;;  %v410_v8 = vsub.f32 %v367_v37, %v396_v6 }
 0x391   :  { %v399_v9 = vpop.xlane.xlu1 %398 }
 0x392   :  { %1695 = vpow2.f32 %v420_v7  ;;  %v422_v10 = vmul.f32 1.442695, %v410_v8  ;;  %v411_v11 = vsub.f32 %v370_v53, %v399_v9 }
 0x393   :  { %v402_v12 = vpop.xlane.xlu0 %401 }
 0x394   :  { %1697 = vpow2.f32 %v422_v10  ;;  %v424_v13 = vmul.f32 1.442695, %v411_v11  ;;  %v412_v15 = vsub.f32 %v375_v49, %v402_v12 }
 0x395   :  { %v405_v18 = vpop.xlane.xlu1 %404 }
 0x396   :  { %v1690_v20 = vpop.eup %1689  ;;  %1699 = vpow2.f32 %v424_v13  ;;  %v426_v21 = vmul.f32 1.442695, %v412_v15  ;;  %v413_v23 = vsub.f32 %v378_v55, %v405_v18 }
 0x397   :  { %v430_v24 = vsel %vm381_vm2, %v1690_v20, 0.0 }
 0x398   :  { %v1692_v25 = vpop.eup %1691  ;;  %1701 = vpow2.f32 %v426_v21  ;;  %v428_v27 = vmul.f32 1.442695, %v413_v23  ;;  %431 = vadd.xlane.f32.xlu0 %v430_v24 }
 0x399   :  { %v433_v29 = vsel %vm381_vm2, %v1692_v25, 0.0 }
 0x39a   :  { %v1694_v30 = vpop.eup %1693  ;;  %1703 = vpow2.f32 %v428_v27  ;;  %434 = vadd.xlane.f32.xlu1 %v433_v29  ;;  %v1670_v27 = vld [vmem:[%s2248_s5 + $0x38] sm:$0xff]  }
 0x39b   :  { %v436_v32 = vsel %vm381_vm2, %v1694_v30, 0.0 }
 0x39c   :  { %v1696_v33 = vpop.eup %1695  ;;  %437 = vadd.xlane.f32.xlu0 %v436_v32 }
 0x39d   :  { %v439_v35 = vsel %vm381_vm2, %v1696_v33, 0.0 }
 0x39e   :  { %v1698_v37 = vpop.eup %1697  ;;  %440 = vadd.xlane.f32.xlu1 %v439_v35 }
 0x39f   :  { %v442_v40 = vsel %vm381_vm2, %v1698_v37, 0.0 }
 0x3a0   :  { %v1700_v41 = vpop.eup %1699  ;;  %443 = vadd.xlane.f32.xlu0 %v442_v40 }
 0x3a1   :  { %v445_v48 = vsel %vm381_vm2, %v1700_v41, 0.0 }
 0x3a2   :  { %v1702_v49 = vpop.eup %1701  ;;  %446 = vadd.xlane.f32.xlu1 %v445_v48 }
 0x3a3   :  { %v448_v53 = vsel %vm381_vm2, %v1702_v49, 0.0 }
 0x3a4   :  { %v1704_v54 = vpop.eup %1703  ;;  %449 = vadd.xlane.f32.xlu0 %v448_v53 }
 0x3a5   :  { %v451_v55 = vsel %vm381_vm2, %v1704_v54, 0.0 }
 0x3a6   :  { %452 = vadd.xlane.f32.xlu1 %v451_v55 }
 0x425   :  { %v432_v56 = vpop.xlane.xlu0 %431 }
 0x426   :  { %1705 = vrcp.f32 %v432_v56 }
 0x427   :  { %v435_v57 = vpop.xlane.xlu1 %434 }
 0x428   :  { %1707 = vrcp.f32 %v435_v57 }
 0x429   :  { %v438_v58 = vpop.xlane.xlu0 %437 }
 0x42a   :  { %1709 = vrcp.f32 %v438_v58 }
 0x42b   :  { %v441_v59 = vpop.xlane.xlu1 %440 }
 0x42c   :  { %1711 = vrcp.f32 %v441_v59 }
 0x42d   :  { %v444_v60 = vpop.xlane.xlu0 %443 }
 0x42e   :  { %1713 = vrcp.f32 %v444_v60 }
 0x42f   :  { %v447_v61 = vpop.xlane.xlu1 %446 }
 0x430   :  { %v1706_v62 = vpop.eup %1705  ;;  %1715 = vrcp.f32 %v447_v61 }
 0x431   :  { %v450_v63 = vpop.xlane.xlu0 %449  ;;  %v462_v2 = vmul.f32 %v1706_v62, %v1690_v20 }
 0x432   :  { %v1708_v0 = vpop.eup %1707  ;;  %1717 = vrcp.f32 %v450_v63 }
 0x433   :  { %v453_v1 = vpop.xlane.xlu1 %452  ;;  %v463_v3 = vmul.f32 %v1708_v0, %v1692_v25  ;;  %v1669_v25 = vld [vmem:[%s2248_s5 + $0x30] sm:$0xff]  }
 0x434   :  { %v1710_v4 = vpop.eup %1709  ;;  %1719 = vrcp.f32 %v453_v1  ;;  %1577 = vmatpush3.bf16.msra.mxu1 %v1669_v25 }
 0x435   :  { %v470_v5 = vpack.c.bf16 %v463_v3, %v462_v2  ;;  %v464_v7 = vmul.f32 %v1710_v4, %v1694_v30  ;;  %1578 = vmatprep.subr.bf16.mxu1 %v1794_v16 }
 0x436   :  { %v1712_v6 = vpop.eup %1711 }
 0x437   :  { %v465_v8 = vmul.f32 %v1712_v6, %v1696_v33  ;;  %1568 = vmatprep.mubr.msk.bf16.mxu0 %vm381_vm2, %v470_v5 }
 0x438   :  { %v1714_v9 = vpop.eup %1713  ;;  %1579 = vmatpush3.bf16.msra.mxu1 %v1670_v27 }
 0x439   :  { %v471_v10 = vpack.c.bf16 %v465_v8, %v464_v7  ;;  %v466_v12 = vmul.f32 %v1714_v9, %v1698_v37  ;;  %1592 = vmatprep.subr.bf16.mxu1 %v1794_v16 }
 0x43a   :  { %v1716_v11 = vpop.eup %1715 }
 0x43b   :  { %1569 = vmatmul.mubr.msk.bf16.vlgmr.msra.gmra.mrb[8].mxu0 %vm381_vm2, %v471_v10  ;;  %v467_v13 = vmul.f32 %v1716_v11, %v1700_v41 }
 0x43c   :  { %v1718_v15 = vpop.eup %1717 }
 0x43d   :  { %v472_v18 = vpack.c.bf16 %v467_v13, %v466_v12  ;;  %v468_v20 = vmul.f32 %v1718_v15, %v1702_v49 }
 0x43e   :  { %v1720_v21 = vpop.eup %1719 }
 0x43f   :  { %1572 = vmatprep.mubr.msk.bf16.mxu0 %vm381_vm2, %v472_v18  ;;  %v469_v23 = vmul.f32 %v1720_v21, %v1704_v54 }
 0x441   :  { %v473_v24 = vpack.c.bf16 %v469_v23, %v468_v20 }
 0x443   :  { %1573 = vmatmul.mubr.msk.bf16.gmra.mrb[12].mxu0 %vm381_vm2, %v473_v24 }
 0x444   :  { %1588 = vmatprep.mubr.msk.bf16.mxu0 %vm1795_vm1, %v1794_v16 }
 0x50e   :  { %v1570_v29 = vpop.f32.mrb[8].mxu0 }
 0x50f   :  { %v553_v30 = vmul.f32 %v1570_v29, %v1912_v44  ;;  %v520_v32 = vpop.f32.mrb[9].mxu0 }
 0x510   :  { %v551_v33 = vmul.f32 %v520_v32, %v1907_v43  ;;  %v1571_v35 = vpop.f32.mrb[10].mxu0 }
 0x511   :  { %v560_v37 = vsel %vm84_vm0, %v553_v30, 0.0  ;;  %v554_v40 = vmul.f32 %v1571_v35, %v1932_v50  ;;  %v523_v41 = vpop.f32.mrb[11].mxu0  ;;  %v1672_v35 = vld [vmem:[%s2248_s5 + $0x50] sm:$0xff]  }
 0x512   :  { %v559_v48 = vsel %vm84_vm0, %v551_v33, 0.0  ;;  %v552_v49 = vmul.f32 %v523_v41, %v1927_v47  ;;  %v34_v41 = vld [vmem:[%s2244_s1 + $0x8] sm:$0xff] }
 0x513   :  { %v561_v53 = vadd.f32 %v560_v37, %v559_v48  ;;  %v567_v54 = vsel %vm84_vm0, %v554_v40, 0.0  ;;  %v1673_v37 = vld [vmem:[%s2248_s5 + $0x58] sm:$0xff]   ;;  %v33_v40 = vld [vmem:[%s2244_s1] sm:$0xff] }
 0x514   :  { %v566_v55 = vsel %vm84_vm0, %v552_v49, 0.0  ;;  %v2078_v48 = vpack.c.bf16 %v34_v41, %v33_v40  ;;  %v1671_v49 = vld [vmem:[%s2248_s5 + $0x40] sm:$0xff]   ;;  %v1676_v41 = vld [vmem:[%s2248_s5 + $0x68] sm:$0xff]  }
 0x515   :  { %v568_v56 = vadd.f32 %v567_v54, %v566_v55  ;;  %1585 = vmatpush3.bf16.msra.mxu0 %v1671_v49  ;;  %v1675_v40 = vld [vmem:[%s2248_s5 + $0x60] sm:$0xff]  }
 0x516   :  { %v1574_v57 = vpop.f32.mrb[12].mxu0  ;;  %1586 = vmatprep.subr.bf16.mxu0 %v1794_v16 }
 0x517   :  { %v536_v58 = vpop.f32.mrb[13].mxu0  ;;  %v557_v59 = vmul.f32 %v1574_v57, %v1922_v46 }
 0x518   :  { %v555_v60 = vmul.f32 %v536_v58, %v1917_v45  ;;  %v1575_v61 = vpop.f32.mrb[14].mxu0 }
 0x519   :  { %v539_v62 = vpop.f32.mrb[15].mxu0  ;;  %v558_v0 = vmul.f32 %v1575_v61, %v1942_v52  ;;  %v564_v3 = vsel %vm84_vm0, %v557_v59, 0.0 }
 0x51a   :  { %v562_v63 = vsel %vm84_vm0, %v555_v60, 0.0  ;;  %v556_v1 = vmul.f32 %v539_v62, %v1937_v51  ;;  %v660_v60 = vsub.s32 2, %v1875_v26  ;;  %v666_v62 = vsub.s32 3, %v1875_v26 }
 0x51b   :  { %v563_v2 = vadd.f32 %v562_v63, %v561_v53  ;;  %v571_v7 = vsel %vm84_vm0, %v558_v0, 0.0  ;;  %v1674_v53 = vld [vmem:[%s2248_s5 + $0x48] sm:$0xff]  }
 0x51c   :  { %v569_v4 = vsel %vm84_vm0, %v556_v1, 0.0  ;;  %1587 = vmatpush3.bf16.msra.mxu0 %v1674_v53  ;;  %v661_v61 = vrot.slane %v1881_v28, %v660_v60 }
 0x51d   :  { %v565_v5 = vadd.f32 %v564_v3, %v563_v2  ;;  %v570_v6 = vadd.f32 %v569_v4, %v568_v56  ;;  %1600 = vmatprep.subr.bf16.mxu0 %v1794_v16  ;;  %v667_v2 = vrot.slane %v1881_v28, %v666_v62 }
 0x51f   :  { %v572_v8 = vadd.f32 %v571_v7, %v570_v6 }
 0x521   :  { %v573_v9 = vpack.c.bf16 %v572_v8, %v565_v5 }
 0x523   :  { %1581 = vmatmul.mubr.msk.bf16.vlgmr.msra.gmra.mrb[12].mxu1 %vm84_vm0, %v573_v9 }
 0x524   :  { %1596 = vmatprep.mubr.msk.bf16.mxu1 %vm1795_vm1, %v1794_v16  ;;  %1593 = vmatpush3.bf16.msra.mxu1 %v1672_v35 }
 0x525   :  { %1594 = vmatprep.subr.bf16.mxu1 %v1794_v16 }
 0x528   :  { %1595 = vmatpush3.bf16.msra.mxu1 %v1673_v37 }
 0x52b   :  { %1597 = vmatmul.mubr.msk.bf16.vlgmr.msra.gmra.mrb[16].mxu1 %vm84_vm0, %v2078_v48 }
 0x5f6   :  { %v623_v10 = vpop.f32.mrb[12].mxu1 }
 0x5f7   :  { %v630_v11 = vadd.f32 %v623_v10, %v1886_v38  ;;  %v1582_v12 = vpop.f32.mrb[13].mxu1 }
 0x5f8   :  { %v626_v13 = vpop.f32.mrb[14].mxu1 }
 0x5f9   :  { %v631_v15 = vadd.f32 %v626_v13, %v1888_v39  ;;  %v1583_v18 = vpop.f32.mrb[15].mxu1  ;;  %v632_v21 = vsel %vm84_vm0, %v630_v11, 0.0 }
 0x5fa   :  { %633 = vadd.xlane.f32.xlu0 %v632_v21 }
 0x5fb   :  { %v635_v20 = vsel %vm84_vm0, %v631_v15, 0.0 }
 0x5fc   :  { %636 = vadd.xlane.f32.xlu1 %v635_v20 }
 0x5fe   :  { %v789_v9 = vpop.f32.mrb[16].mxu1 }
 0x5ff   :  { %v1598_v10 = vpop.f32.mrb[17].mxu1 }
 0x687   :  { %v634_v23 = vpop.xlane.xlu0 %633 }
 0x688   :  { %v638_v24 = vmul.f32 0.03125, %v634_v23 }
 0x689   :  { %v637_v25 = vpop.xlane.xlu1 %636 }
 0x68a   :  { %v640_v27 = vsub.f32 %v630_v11, %v638_v24  ;;  %v639_v29 = vmul.f32 0.03125, %v637_v25  ;;  %v792_v11 = vpop.f32.mrb[18].mxu1 }
 0x68b   :  { %v796_v12 = vpack.c.bf16 %v792_v11, %v789_v9  ;;  %v1599_v28 = vpop.f32.mrb[19].mxu1 }
 0x68c   :  { %v641_v30 = vsub.f32 %v631_v15, %v639_v29  ;;  %v642_v32 = vmul.f32 %v640_v27, %v640_v27 }
 0x68d   :  { %v864_v13 = vsel %vm84_vm0, %v796_v12, 0  ;;  %1657 = vmatprep.subr.msk.bf16.mxu1 %vm84_vm0, %v796_v12 }
 0x68e   :  { %v644_v38 = vsel %vm84_vm0, %v642_v32, 0.0  ;;  %v643_v33 = vmul.f32 %v641_v30, %v641_v30  ;;  %1609 = vmatpush3.bf16.xpose.msra.mxu1 %v864_v13 }
 0x68f   :  { %645 = vadd.xlane.f32.xlu0 %v644_v38  ;;  %1628 = vmatprep.subr.bf16.mxu1 %v1794_v16 }
 0x690   :  { %v647_v39 = vsel %vm84_vm0, %v643_v33, 0.0 }
 0x691   :  { %648 = vadd.xlane.f32.xlu1 %v647_v39 }
 0x71c   :  { %v646_v54 = vpop.xlane.xlu0 %645 }
 0x71d   :  { %v650_v55 = vmul.f32 0.03125, %v646_v54 }
 0x71e   :  { %v649_v56 = vpop.xlane.xlu1 %648 }
 0x71f   :  { %v652_v57 = vadd.f32 1e-05, %v650_v55  ;;  %v651_v58 = vmul.f32 0.03125, %v649_v56 }
 0x721   :  { %1721 = vrsqrt.f32 %v652_v57  ;;  %v653_v59 = vadd.f32 1e-05, %v651_v58 }
 0x723   :  { %1723 = vrsqrt.f32 %v653_v59 }
 0x72b   :  { %v1722_v63 = vpop.eup %1721 }
 0x72c   :  { %v656_v0 = vmul.f32 %v1722_v63, %v640_v27 }
 0x72d   :  { %v1724_v1 = vpop.eup %1723 }
 0x72e   :  { %v662_v3 = vmul.f32 %v661_v61, %v656_v0  ;;  %v657_v4 = vmul.f32 %v1724_v1, %v641_v30 }
 0x730   :  { %v663_v5 = vmul.f32 %v661_v61, %v657_v4  ;;  %v2094_v6 = vadd.f32 %v667_v2, %v662_v3 }
 0x732   :  { %v2096_v7 = vadd.f32 %v667_v2, %v663_v5 }
 0x734   :  { %v670_v8 = vpack.c.bf16 %v2096_v7, %v2094_v6 }
 0x736   :  { %1589 = vmatmul.mubr.msk.bf16.vlgmr.msra.gmra.mrb[16].mxu0 %vm84_vm0, %v670_v8 }
 0x737   :  { %1604 = vmatprep.mubr.msk.bf16.mxu0 %vm1795_vm1, %v1794_v16  ;;  %1601 = vmatpush3.bf16.msra.mxu0 %v1675_v40 }
 0x738   :  { %1602 = vmatprep.subr.bf16.mxu0 %v1794_v16 }
 0x73b   :  { %1603 = vmatpush3.bf16.msra.mxu0 %v1676_v41 }
 0x73e   :  { %1605 = vmatmul.mubr.msk.bf16.vlgmr.msra.gmra.mrb[20].mxu0 %vm84_vm0, %v2078_v48 }
 0x809   :  { %v720_v15 = vpop.f32.mrb[16].mxu0 }
 0x80a   :  { %v1590_v18 = vpop.f32.mrb[17].mxu0  ;;  %v727_v21 = vmul.f32 %v720_v15, %v1907_v43  ;;  %v729_v20 = vmul.f32 %v720_v15, %v1912_v44  ;;  %v731_v23 = vmul.f32 %v720_v15, %v1917_v45  ;;  %v733_v24 = vmul.f32 %v720_v15, %v1922_v46 }
 0x80b   :  { %v723_v25 = vpop.f32.mrb[18].mxu0 }
 0x80c   :  { %v728_v27 = vmul.f32 %v723_v25, %v1927_v47  ;;  %v730_v29 = vmul.f32 %v723_v25, %v1932_v50  ;;  %v732_v30 = vmul.f32 %v723_v25, %v1937_v51  ;;  %v734_v32 = vmul.f32 %v723_v25, %v1942_v52  ;;  %v1591_v38 = vpop.f32.mrb[19].mxu0 }
 0x80e   :  { %v736_v33 = vpack.c.bf16 %v730_v29, %v729_v20  ;;  %v735_v39 = vpack.c.bf16 %v728_v27, %v727_v21  ;;  %v737_v35 = vpack.c.bf16 %v732_v30, %v731_v23  ;;  %v738_v37 = vpack.c.bf16 %v734_v32, %v733_v24 }
 0x810   :  { %1610 = vmatprep.mubr.msk.bf16.mxu1 %vm84_vm0, %v735_v39 }
 0x811   :  { %1611 = vmatmul.mubr.msk.bf16.vlgmr.msra.gmra.mrb[20].mxu1 %vm84_vm0, %v736_v33 }
 0x812   :  { %1614 = vmatprep.mubr.msk.bf16.mxu1 %vm84_vm0, %v737_v35 }
 0x819   :  { %1615 = vmatmul.mubr.msk.bf16.gmra.mrb[24].mxu1 %vm84_vm0, %v738_v37 }
 0x81a   :  { %1632 = vmatprep.mubr.msk.bf16.mxu1 %vm1795_vm1, %v1794_v16 }
 0x8e4   :  { %v1612_v49 = vpop.f32.mrb[20].mxu1 }
 0x8e5   :  { %v900_v53 = vpop.f32.mrb[21].mxu1  ;;  %v909_v57 = vadd.f32 %v1612_v49, %v1970_v17 }
 0x8e6   :  { %v901_v54 = vadd.f32 %v900_v53, %v1965_v14  ;;  %v1613_v55 = vpop.f32.mrb[22].mxu1 }
 0x8e7   :  { %v903_v56 = vpop.f32.mrb[23].mxu1  ;;  %v912_v60 = vadd.f32 %v1613_v55, %v1981_v22  ;;  %v937_v48 = vsel %vm381_vm2, %v909_v57, -inf }
 0x8e8   :  { %v904_v58 = vadd.f32 %v903_v56, %v1975_v19  ;;  %v931_v59 = vsel %vm381_vm2, %v901_v54, -inf }
 0x8e9   :  { %932 = vmax.xlane.f32.xlu0 %v931_v59  ;;  %v940_v17 = vsel %vm381_vm2, %v912_v60, -inf }
 0x8ea   :  { %v934_v61 = vsel %vm381_vm2, %v904_v58, -inf }
 0x8eb   :  { %935 = vmax.xlane.f32.xlu1 %v934_v61 }
 0x8ec   :  { %v1616_v62 = vpop.f32.mrb[24].mxu1 }
 0x8ed   :  { %v916_v63 = vpop.f32.mrb[25].mxu1  ;;  %938 = vmax.xlane.f32.xlu0 %v937_v48  ;;  %v925_v19 = vadd.f32 %v1616_v62, %v1997_v34 }
 0x8ee   :  { %v917_v14 = vadd.f32 %v916_v63, %v1991_v31  ;;  %v1617_v0 = vpop.f32.mrb[26].mxu1  ;;  %v843_v63 = vpop.f32.mrb[20].mxu0 }
 0x8ef   :  { %v919_v1 = vpop.f32.mrb[27].mxu1  ;;  %941 = vmax.xlane.f32.xlu1 %v940_v17  ;;  %v928_v3 = vadd.f32 %v1617_v0, %v2009_v42  ;;  %v949_v5 = vsel %vm381_vm2, %v925_v19, -inf }
 0x8f0   :  { %v920_v2 = vadd.f32 %v919_v1, %v2002_v36  ;;  %v943_v22 = vsel %vm381_vm2, %v917_v14, -inf }
 0x8f1   :  { %944 = vmax.xlane.f32.xlu0 %v943_v22  ;;  %v952_v31 = vsel %vm381_vm2, %v928_v3, -inf }
 0x8f2   :  { %v946_v4 = vsel %vm381_vm2, %v920_v2, -inf }
 0x8f3   :  { %947 = vmax.xlane.f32.xlu1 %v946_v4 }
 0x8f5   :  { %950 = vmax.xlane.f32.xlu0 %v949_v5 }
 0x8f7   :  { %953 = vmax.xlane.f32.xlu1 %v952_v31 }
 0x976   :  { %v933_v8 = vpop.xlane.xlu0 %932 }
 0x977   :  { %v955_v9 = vsub.f32 %v901_v54, %v933_v8 }
 0x978   :  { %v936_v10 = vpop.xlane.xlu1 %935 }
 0x979   :  { %v963_v34 = vmul.f32 1.442695, %v955_v9  ;;  %v956_v11 = vsub.f32 %v904_v58, %v936_v10 }
 0x97a   :  { %v939_v36 = vpop.xlane.xlu0 %938 }
 0x97b   :  { %1725 = vpow2.f32 %v963_v34  ;;  %v965_v12 = vmul.f32 1.442695, %v956_v11  ;;  %v957_v28 = vsub.f32 %v909_v57, %v939_v36 }
 0x97c   :  { %v942_v13 = vpop.xlane.xlu1 %941 }
 0x97d   :  { %1727 = vpow2.f32 %v965_v12  ;;  %v967_v42 = vmul.f32 1.442695, %v957_v28  ;;  %v958_v15 = vsub.f32 %v912_v60, %v942_v13 }
 0x97e   :  { %v945_v18 = vpop.xlane.xlu0 %944 }
 0x97f   :  { %1729 = vpow2.f32 %v967_v42  ;;  %v969_v21 = vmul.f32 1.442695, %v958_v15  ;;  %v959_v20 = vsub.f32 %v917_v14, %v945_v18  ;;  %v1606_v14 = vpop.f32.mrb[21].mxu0 }
 0x980   :  { %v948_v23 = vpop.xlane.xlu1 %947  ;;  %v846_v0 = vpop.f32.mrb[22].mxu0 }
 0x981   :  { %1731 = vpow2.f32 %v969_v21  ;;  %v971_v24 = vmul.f32 1.442695, %v959_v20  ;;  %v960_v25 = vsub.f32 %v920_v2, %v948_v23  ;;  %v850_v17 = vpack.c.bf16 %v846_v0, %v843_v63  ;;  %v1607_v1 = vpop.f32.mrb[23].mxu0 }
 0x982   :  { %v951_v27 = vpop.xlane.xlu0 %950 }
 0x983   :  { %1733 = vpow2.f32 %v971_v24  ;;  %v973_v29 = vmul.f32 1.442695, %v960_v25  ;;  %v961_v30 = vsub.f32 %v925_v19, %v951_v27  ;;  %1618 = vmatprep.subr.bf16.mxu0 %v850_v17 }
 0x984   :  { %v954_v32 = vpop.xlane.xlu1 %953  ;;  %1619 = vmatpush3.bf16.msra.mxu0 %v850_v17 }
 0x985   :  { %v1726_v38 = vpop.eup %1725  ;;  %1735 = vpow2.f32 %v973_v29  ;;  %v975_v33 = vmul.f32 1.442695, %v961_v30  ;;  %v962_v39 = vsub.f32 %v928_v3, %v954_v32  ;;  %1636 = vmatprep.subr.bf16.mxu0 %v1794_v16 }
 0x986   :  { %v979_v35 = vsel %vm381_vm2, %v1726_v38, 0.0 }
 0x987   :  { %v1728_v37 = vpop.eup %1727  ;;  %1737 = vpow2.f32 %v975_v33  ;;  %v977_v40 = vmul.f32 1.442695, %v962_v39  ;;  %980 = vadd.xlane.f32.xlu0 %v979_v35  ;;  %v1678_v33 = vld [vmem:[%s2248_s5 + $0x78] sm:$0xff]  }
 0x988   :  { %v982_v41 = vsel %vm381_vm2, %v1728_v37, 0.0 }
 0x989   :  { %v1730_v49 = vpop.eup %1729  ;;  %1739 = vpow2.f32 %v977_v40  ;;  %983 = vadd.xlane.f32.xlu1 %v982_v41 }
 0x98a   :  { %v985_v53 = vsel %vm381_vm2, %v1730_v49, 0.0 }
 0x98b   :  { %v1732_v54 = vpop.eup %1731  ;;  %986 = vadd.xlane.f32.xlu0 %v985_v53 }
 0x98c   :  { %v988_v55 = vsel %vm381_vm2, %v1732_v54, 0.0 }
 0x98d   :  { %v1734_v56 = vpop.eup %1733  ;;  %989 = vadd.xlane.f32.xlu1 %v988_v55 }
 0x98e   :  { %v991_v57 = vsel %vm381_vm2, %v1734_v56, 0.0 }
 0x98f   :  { %v1736_v58 = vpop.eup %1735  ;;  %992 = vadd.xlane.f32.xlu0 %v991_v57 }
 0x990   :  { %v994_v59 = vsel %vm381_vm2, %v1736_v58, 0.0 }
 0x991   :  { %v1738_v60 = vpop.eup %1737  ;;  %995 = vadd.xlane.f32.xlu1 %v994_v59 }
 0x992   :  { %v997_v61 = vsel %vm381_vm2, %v1738_v60, 0.0 }
 0x993   :  { %v1740_v62 = vpop.eup %1739  ;;  %998 = vadd.xlane.f32.xlu0 %v997_v61 }
 0x994   :  { %v1000_v48 = vsel %vm381_vm2, %v1740_v62, 0.0 }
 0x995   :  { %1001 = vadd.xlane.f32.xlu1 %v1000_v48 }
 0xa14   :  { %v981_v19 = vpop.xlane.xlu0 %980 }
 0xa15   :  { %1741 = vrcp.f32 %v981_v19 }
 0xa16   :  { %v984_v2 = vpop.xlane.xlu1 %983 }
 0xa17   :  { %1743 = vrcp.f32 %v984_v2 }
 0xa18   :  { %v987_v22 = vpop.xlane.xlu0 %986 }
 0xa19   :  { %1745 = vrcp.f32 %v987_v22 }
 0xa1a   :  { %v990_v3 = vpop.xlane.xlu1 %989 }
 0xa1b   :  { %1747 = vrcp.f32 %v990_v3 }
 0xa1c   :  { %v993_v4 = vpop.xlane.xlu0 %992 }
 0xa1d   :  { %1749 = vrcp.f32 %v993_v4 }
 0xa1e   :  { %v996_v5 = vpop.xlane.xlu1 %995 }
 0xa1f   :  { %v1742_v31 = vpop.eup %1741  ;;  %1751 = vrcp.f32 %v996_v5 }
 0xa20   :  { %v999_v8 = vpop.xlane.xlu0 %998  ;;  %v1011_v34 = vmul.f32 %v1742_v31, %v1726_v38  ;;  %v1677_v38 = vld [vmem:[%s2248_s5 + $0x70] sm:$0xff]  }
 0xa21   :  { %v1744_v9 = vpop.eup %1743  ;;  %1753 = vrcp.f32 %v999_v8  ;;  %1629 = vmatpush3.bf16.msra.mxu1 %v1677_v38  ;;  %v1215_v38 = vsub.s32 5, %v1875_v26 }
 0xa22   :  { %v1002_v10 = vpop.xlane.xlu1 %1001  ;;  %v1012_v11 = vmul.f32 %v1744_v9, %v1728_v37  ;;  %1630 = vmatprep.subr.bf16.mxu1 %v1794_v16 }
 0xa23   :  { %v1746_v36 = vpop.eup %1745  ;;  %1755 = vrcp.f32 %v1002_v10 }
 0xa24   :  { %v1019_v12 = vpack.c.bf16 %v1012_v11, %v1011_v34  ;;  %v1013_v13 = vmul.f32 %v1746_v36, %v1730_v49 }
 0xa25   :  { %v1748_v28 = vpop.eup %1747  ;;  %1631 = vmatpush3.bf16.msra.mxu1 %v1678_v33 }
 0xa26   :  { %v1014_v42 = vmul.f32 %v1748_v28, %v1732_v54  ;;  %1620 = vmatprep.mubr.msk.bf16.mxu0 %vm381_vm2, %v1019_v12  ;;  %1644 = vmatprep.subr.bf16.mxu1 %v1794_v16 }
 0xa27   :  { %v1750_v15 = vpop.eup %1749 }
 0xa28   :  { %v1020_v18 = vpack.c.bf16 %v1014_v42, %v1013_v13  ;;  %v1015_v20 = vmul.f32 %v1750_v15, %v1734_v56  ;;  %v1679_v15 = vld [vmem:[%s2249_s6] sm:$0xff]  }
 0xa29   :  { %v1752_v21 = vpop.eup %1751 }
 0xa2a   :  { %1621 = vmatmul.mubr.msk.bf16.vlgmr.msra.gmra.mrb[24].mxu0 %vm381_vm2, %v1020_v18  ;;  %v1016_v23 = vmul.f32 %v1752_v21, %v1736_v58  ;;  %v1680_v18 = vld [vmem:[%s2249_s6 + $0x8] sm:$0xff]  }
 0xa2b   :  { %v1754_v24 = vpop.eup %1753  ;;  %1637 = vmatpush3.bf16.msra.mxu0 %v1679_v15 }
 0xa2c   :  { %v1021_v25 = vpack.c.bf16 %v1016_v23, %v1015_v20  ;;  %v1017_v29 = vmul.f32 %v1754_v24, %v1738_v60  ;;  %1638 = vmatprep.subr.bf16.mxu0 %v1794_v16 }
 0xa2d   :  { %v1756_v27 = vpop.eup %1755 }
 0xa2e   :  { %1624 = vmatprep.mubr.msk.bf16.mxu0 %vm381_vm2, %v1021_v25  ;;  %v1018_v30 = vmul.f32 %v1756_v27, %v1740_v62 }
 0xa2f   :  { %1639 = vmatpush3.bf16.msra.mxu0 %v1680_v18 }
 0xa30   :  { %v1022_v32 = vpack.c.bf16 %v1018_v30, %v1017_v29  ;;  %v1209_v29 = vsub.s32 4, %v1875_v26  ;;  %v1769_v30 = vld [vmem:[%s2247_s4] sm:$0x3f] }
 0xa31   :  { %v1681_v26 = vld [vmem:[%s2250_s7] sm:$0xff]  }
 0xa32   :  { %1625 = vmatmul.mubr.msk.bf16.gmra.mrb[28].mxu0 %vm381_vm2, %v1022_v32  ;;  %v1210_v32 = vrot.slane %v1769_v30, %v1209_v29 }
 0xa33   :  { %1640 = vmatprep.mubr.msk.bf16.mxu0 %vm1795_vm1, %v1794_v16 }
 0xafd   :  { %v1622_v39 = vpop.f32.mrb[24].mxu0 }
 0xafe   :  { %v1102_v35 = vmul.f32 %v1622_v39, %v1912_v44  ;;  %v1069_v37 = vpop.f32.mrb[25].mxu0 }
 0xaff   :  { %v1100_v40 = vmul.f32 %v1069_v37, %v1907_v43  ;;  %v1623_v41 = vpop.f32.mrb[26].mxu0  ;;  %v1216_v37 = vrot.slane %v1769_v30, %v1215_v38 }
 0xb00   :  { %v1109_v49 = vsel %vm84_vm0, %v1102_v35, 0.0  ;;  %v1103_v53 = vmul.f32 %v1623_v41, %v1932_v50  ;;  %v1072_v54 = vpop.f32.mrb[27].mxu0 }
 0xb01   :  { %v1108_v55 = vsel %vm84_vm0, %v1100_v40, 0.0  ;;  %v1101_v56 = vmul.f32 %v1072_v54, %v1927_v47 }
 0xb02   :  { %v1110_v57 = vadd.f32 %v1109_v49, %v1108_v55  ;;  %v1116_v58 = vsel %vm84_vm0, %v1103_v53, 0.0 }
 0xb03   :  { %v1115_v59 = vsel %vm84_vm0, %v1101_v56, 0.0  ;;  %v1682_v56 = vld [vmem:[%s2250_s7 + $0x8] sm:$0xff]  }
 0xb04   :  { %v1117_v60 = vadd.f32 %v1116_v58, %v1115_v59  ;;  %v1684_v58 = vld [vmem:[%s2250_s7 + $0x18] sm:$0xff]  }
 0xb05   :  { %v1626_v44 = vpop.f32.mrb[28].mxu0 }
 0xb06   :  { %v1085_v61 = vpop.f32.mrb[29].mxu0  ;;  %v1106_v43 = vmul.f32 %v1626_v44, %v1922_v46 }
 0xb07   :  { %v1104_v62 = vmul.f32 %v1085_v61, %v1917_v45  ;;  %v1627_v48 = vpop.f32.mrb[30].mxu0 }
 0xb08   :  { %v1088_v63 = vpop.f32.mrb[31].mxu0  ;;  %v1107_v14 = vmul.f32 %v1627_v48, %v1942_v52  ;;  %v1113_v17 = vsel %vm84_vm0, %v1106_v43, 0.0 }
 0xb09   :  { %v1111_v50 = vsel %vm84_vm0, %v1104_v62, 0.0  ;;  %v1105_v47 = vmul.f32 %v1088_v63, %v1937_v51 }
 0xb0a   :  { %v1112_v0 = vadd.f32 %v1111_v50, %v1110_v57  ;;  %v1120_v22 = vsel %vm84_vm0, %v1107_v14, 0.0  ;;  %v1683_v57 = vld [vmem:[%s2250_s7 + $0x10] sm:$0xff]   ;;  %s1796_s7 = smov [#allocation2]  }
 0xb0b   :  { %v1118_v1 = vsel %vm84_vm0, %v1105_v47, 0.0  ;;  %s1421_s3 = sshll.u32 %s1796_s7, 4  ;;  %s1422_s3 = int_to_ptr.vmem [resolvable:$true] %s1421_s3 }
 0xb0c   :  { %v1114_v19 = vadd.f32 %v1113_v17, %v1112_v0  ;;  %v1119_v2 = vadd.f32 %v1118_v1, %v1117_v60  ;;  %s1770_s15 = scalar_lea.vmem %s1422_s3, 256  ;;  %p1775_p1 = scmp.lt.s32.totalorder %s1422_s3, %s1422_s3 }
 0xb0d   :  { %p1771_p0 = scmp.ne.s32.totalorder %s1422_s3, %s1770_s15  ;;  %p1776_p2 = scmp.lt.s32.totalorder %s1770_s15, %s1770_s15 }
 0xb0e   :  { %v1121_v46 = vadd.f32 %v1120_v22, %v1119_v2 }
 0xb0f   :  { %p1777_p3 = por %p1776_p2, %p1775_p1 }
 0xb10   :  { %v1122_v3 = vpack.c.bf16 %v1121_v46, %v1114_v19 }
 0xb11   :  { %p1778_p4 = pnand %p1777_p3, %p1771_p0 }
 0xb12   :  { %1633 = vmatmul.mubr.msk.bf16.vlgmr.msra.gmra.mrb[28].mxu1 %vm84_vm0, %v1122_v3 }
 0xb13   :  { %1652 = vmatprep.mubr.msk.bf16.mxu1 %vm1795_vm1, %v1794_v16  ;;  %1645 = vmatpush3.bf16.msra.mxu1 %v1681_v26 }
 0xb14   :  { %1646 = vmatprep.subr.bf16.mxu1 %v1794_v16 }
 0xb17   :  { %1647 = vmatpush3.bf16.msra.mxu1 %v1682_v56 }
 0xb18   :  { %1648 = vmatprep.subr.bf16.mxu1 %v1794_v16 }
 0xb1b   :  { %1649 = vmatpush3.bf16.msra.mxu1 %v1683_v57 }
 0xb1c   :  { %1650 = vmatprep.subr.bf16.mxu1 %v1794_v16 }
 0xb1f   :  { %1651 = vmatpush3.bf16.msra.mxu1 %v1684_v58 }
 0xbe5   :  { %v1172_v45 = vpop.f32.mrb[28].mxu1 }
 0xbe6   :  { %v1179_v52 = vadd.f32 %v1172_v45, %v2094_v6  ;;  %v1634_v51 = vpop.f32.mrb[29].mxu1 }
 0xbe7   :  { %v1175_v4 = vpop.f32.mrb[30].mxu1 }
 0xbe8   :  { %v1180_v5 = vadd.f32 %v1175_v4, %v2096_v7  ;;  %v1635_v31 = vpop.f32.mrb[31].mxu1  ;;  %v1181_v8 = vsel %vm84_vm0, %v1179_v52, 0.0 }
 0xbe9   :  { %1182 = vadd.xlane.f32.xlu0 %v1181_v8 }
 0xbea   :  { %v1184_v9 = vsel %vm84_vm0, %v1180_v5, 0.0 }
 0xbeb   :  { %1185 = vadd.xlane.f32.xlu1 %v1184_v9 }
 0xc76   :  { %v1183_v10 = vpop.xlane.xlu0 %1182 }
 0xc77   :  { %v1187_v34 = vmul.f32 0.03125, %v1183_v10 }
 0xc78   :  { %v1186_v11 = vpop.xlane.xlu1 %1185 }
 0xc79   :  { %v1189_v36 = vsub.f32 %v1179_v52, %v1187_v34  ;;  %v1188_v12 = vmul.f32 0.03125, %v1186_v11 }
 0xc7b   :  { %v1190_v28 = vsub.f32 %v1180_v5, %v1188_v12  ;;  %v1191_v13 = vmul.f32 %v1189_v36, %v1189_v36 }
 0xc7d   :  { %v1193_v6 = vsel %vm84_vm0, %v1191_v13, 0.0  ;;  %v1192_v42 = vmul.f32 %v1190_v28, %v1190_v28 }
 0xc7e   :  { %1194 = vadd.xlane.f32.xlu0 %v1193_v6 }
 0xc7f   :  { %v1196_v7 = vsel %vm84_vm0, %v1192_v42, 0.0 }
 0xc80   :  { %1197 = vadd.xlane.f32.xlu1 %v1196_v7 }
 0xd0b   :  { %v1195_v21 = vpop.xlane.xlu0 %1194 }
 0xd0c   :  { %v1199_v20 = vmul.f32 0.03125, %v1195_v21 }
 0xd0d   :  { %v1198_v23 = vpop.xlane.xlu1 %1197 }
 0xd0e   :  { %v1201_v24 = vadd.f32 1e-05, %v1199_v20  ;;  %v1200_v25 = vmul.f32 0.03125, %v1198_v23 }
 0xd10   :  { %1757 = vrsqrt.f32 %v1201_v24  ;;  %v1202_v27 = vadd.f32 1e-05, %v1200_v25 }
 0xd12   :  { %1759 = vrsqrt.f32 %v1202_v27 }
 0xd1a   :  { %v1758_v33 = vpop.eup %1757 }
 0xd1b   :  { %v1205_v39 = vmul.f32 %v1758_v33, %v1189_v36 }
 0xd1c   :  { %v1760_v35 = vpop.eup %1759 }
 0xd1d   :  { %v1211_v40 = vmul.f32 %v1210_v32, %v1205_v39  ;;  %v1206_v41 = vmul.f32 %v1760_v35, %v1190_v28 }
 0xd1f   :  { %v1212_v49 = vmul.f32 %v1210_v32, %v1206_v41  ;;  %v2205_v53 = vadd.f32 %v1216_v37, %v1211_v40 }
 0xd21   :  { %v2207_v54 = vadd.f32 %v1216_v37, %v1212_v49 }
 0xd23   :  { %v1219_v55 = vpack.c.bf16 %v2207_v54, %v2205_v53 }
 0xd25   :  { %1641 = vmatmul.mubr.msk.bf16.vlgmr.msra.gmra.mrb[32].mxu0 %vm84_vm0, %v1219_v55 }
 0xdf8   :  { %v1273_v59 = vpop.f32.mrb[32].mxu0 }
 0xdf9   :  { %v1280_v60 = vmul.f32 0.70710677, %v1273_v59  ;;  %v1642_v44 = vpop.f32.mrb[33].mxu0  ;;  %v1328_v38 = vmul.f32 0.5, %v1273_v59 }
 0xdfa   :  { %v1276_v61 = vpop.f32.mrb[34].mxu0 }
 0xdfb   :  { %v1282_v43 = vand.u32 2147483647, %v1280_v60  ;;  %v1281_v62 = vmul.f32 0.70710677, %v1276_v61  ;;  %v1643_v48 = vpop.f32.mrb[35].mxu0  ;;  %vm1322_vm3 = vcmp.ge.f32.partialorder %v1280_v60, 0.0 }
 0xdfc   :  { %v1329_v33 = vmul.f32 0.5, %v1276_v61 }
 0xdfd   :  { %v1284_v63 = vmul.f32 0.3275911, %v1282_v43  ;;  %v1283_v50 = vand.u32 2147483647, %v1281_v62  ;;  %v1310_v16 = vsub.f32 0.0, %v1282_v43  ;;  %vm1323_vm4 = vcmp.ge.f32.partialorder %v1281_v62, 0.0 }
 0xdff   :  { %v1286_v14 = vadd.f32 1.0, %v1284_v63  ;;  %v1285_v47 = vmul.f32 0.3275911, %v1283_v50  ;;  %v1311_v17 = vsub.f32 0.0, %v1283_v50  ;;  %v1312_v19 = vmul.f32 %v1310_v16, %v1282_v43 }
 0xe01   :  { %1761 = vrcp.f32 %v1286_v14  ;;  %v1287_v0 = vadd.f32 1.0, %v1285_v47  ;;  %v1313_v3 = vmul.f32 %v1311_v17, %v1283_v50  ;;  %v1314_v45 = vmul.f32 1.442695, %v1312_v19 }
 0xe03   :  { %1763 = vrcp.f32 %v1287_v0  ;;  %v1316_v31 = vmul.f32 1.442695, %v1313_v3 }
 0xe04   :  { %1765 = vpow2.f32 %v1314_v45 }
 0xe05   :  { %1767 = vpow2.f32 %v1316_v31 }
 0xe0b   :  { %v1762_v1 = vpop.eup %1761 }
 0xe0c   :  { %v1292_v2 = vmul.f32 1.0614054, %v1762_v1 }
 0xe0d   :  { %v1764_v22 = vpop.eup %1763 }
 0xe0e   :  { %v1294_v46 = vadd.f32 -1.4531521, %v1292_v2  ;;  %v1293_v52 = vmul.f32 1.0614054, %v1764_v22  ;;  %v1766_v42 = vpop.eup %1765 }
 0xe0f   :  { %v1768_v21 = vpop.eup %1767 }
 0xe10   :  { %v1296_v51 = vmul.f32 %v1762_v1, %v1294_v46  ;;  %v1295_v4 = vadd.f32 -1.4531521, %v1293_v52 }
 0xe12   :  { %v1298_v5 = vadd.f32 1.4214138, %v1296_v51  ;;  %v1297_v8 = vmul.f32 %v1764_v22, %v1295_v4 }
 0xe14   :  { %v1300_v9 = vmul.f32 %v1762_v1, %v1298_v5  ;;  %v1299_v10 = vadd.f32 1.4214138, %v1297_v8 }
 0xe16   :  { %v1302_v34 = vadd.f32 -0.28449672, %v1300_v9  ;;  %v1301_v11 = vmul.f32 %v1764_v22, %v1299_v10 }
 0xe18   :  { %v1304_v36 = vmul.f32 %v1762_v1, %v1302_v34  ;;  %v1303_v12 = vadd.f32 -0.28449672, %v1301_v11 }
 0xe1a   :  { %v1306_v28 = vadd.f32 0.2548296, %v1304_v36  ;;  %v1305_v13 = vmul.f32 %v1764_v22, %v1303_v12 }
 0xe1c   :  { %v1308_v6 = vmul.f32 %v1762_v1, %v1306_v28  ;;  %v1307_v7 = vadd.f32 0.2548296, %v1305_v13 }
 0xe1e   :  { %v1318_v15 = vmul.f32 %v1766_v42, %v1308_v6  ;;  %v1309_v18 = vmul.f32 %v1764_v22, %v1307_v7 }
 0xe20   :  { %v1320_v20 = vsub.f32 1.0, %v1318_v15  ;;  %v1319_v23 = vmul.f32 %v1768_v21, %v1309_v18 }
 0xe22   :  { %v1324_v24 = vsub.f32 0.0, %v1320_v20  ;;  %v1321_v25 = vsub.f32 1.0, %v1319_v23 }
 0xe24   :  { %v1326_v27 = vsel %vm1322_vm3, %v1320_v20, %v1324_v24  ;;  %v1325_v29 = vsub.f32 0.0, %v1321_v25 }
 0xe25   :  { %v1330_v30 = vadd.f32 1.0, %v1326_v27 }
 0xe26   :  { %v1327_v32 = vsel %vm1323_vm4, %v1321_v25, %v1325_v29 }
 0xe27   :  { %v1331_v39 = vadd.f32 1.0, %v1327_v32  ;;  %v1332_v35 = vmul.f32 %v1330_v30, %v1328_v38 }
 0xe29   :  { %v1333_v37 = vmul.f32 %v1331_v39, %v1329_v33 }
 0xe2b   :  { %v1334_v40 = vpack.c.bf16 %v1333_v37, %v1332_v35 }
 0xe2d   :  { %1653 = vmatmul.mubr.msk.bf16.vlgmr.msra.gmra.mrb[32].mxu1 %vm1367_vm5, %v1334_v40 }
 0xf00   :  { %v1405_v41 = vpop.f32.mrb[32].mxu1 }
 0xf01   :  { %v1412_v49 = vadd.f32 %v1405_v41, %v2205_v53  ;;  %v1654_v55 = vpop.f32.mrb[33].mxu1 }
 0xf02   :  { %v1408_v26 = vpop.f32.mrb[34].mxu1 }
 0xf03   :  { %1414 = vst.msk [vmem:[#allocation2] sm:$0xff] %vm84_vm0, %v1412_v49  ;;  %v1413_v56 = vadd.f32 %v1408_v26, %v2207_v54  ;;  %v1655_v57 = vpop.f32.mrb[35].mxu1 }
 0xf05   :  { %1415 = vst.msk [vmem:[#allocation2 + $0x8] sm:$0xff] %vm84_vm0, %v1413_v56 }
 0xf06   :  { %1781 = shalt.err (!%p1778_p4)
}
 0xf07   :  { %s1782_s18 = scalar_lea.hbm %s2251_s8, 256 }
 0xf08   :  { %p1783_p5 = scmp.ne.s32.totalorder %s2251_s8, %s1782_s18  ;;  %p1786_p6 = scmp.lt.u32.totalorder %s1782_s18, %s2251_s8 }
 0xf0a   :  { %p1788_p7 = pnand %p1786_p6, %p1783_p5 }
 0xf0c   :  { %1791 = shalt.err (!%p1788_p7)
}
 0xf0d   :  { %s1797_s22 = smov 128   ;;  %s1798_s23 = smov 8  }
 0xf0e   :  { %1427 = dma.vmem_to_hbm [thread:$0]  %s1422_s3, 256, %s2251_s8, [#allocation3], %s1797_s22, %s1797_s22, %s1798_s23  }
 0xf0f   :  { %1792 = dma.done.wait [#allocation3], 256  }
 0xf10   :  { %1793 = vsyncadd [#allocation3], 4294967040 }
 0xf11   :  { %1431 = vsyncpa [#allocation3], 1 }

</bundles_post_ra>
